<compile_context>
chip_gen: v6e
topology: v6e:2x2x1
jax: 0.10.0
libtpu: 0.0.40
codegen_flags: <defaults>
</compile_context>

<pallas_src>
import functools

import jax
import jax.numpy as jnp
from jax.experimental import pallas as pl
from jax.experimental.pallas import tpu as pltpu

LANES = 128


def _round_up(x, m):
    return (x + m - 1) // m * m


def _pad2d(a, rows, cols):
    r, c = a.shape
    return jnp.pad(a, ((0, rows - r), (0, cols - c)))


def _adj_matmul(a_bf16, x_f32):
    """A @ X with A exactly {0,1} in bf16.  X is split into hi/lo bf16 halves so the
    two bf16 MXU passes (accumulated in f32) reproduce ~f32 accuracy."""
    x_hi = x_f32.astype(jnp.bfloat16)
    x_lo = (x_f32 - x_hi.astype(jnp.float32)).astype(jnp.bfloat16)
    acc = jnp.dot(a_bf16, x_hi, preferred_element_type=jnp.float32)
    acc = acc + jnp.dot(a_bf16, x_lo, preferred_element_type=jnp.float32)
    return acc


def _vmem_limit(est_bytes):
    return int(min(48 * 1024 * 1024, max(32 * 1024 * 1024, 2 * est_bytes)))


# --------------------------------------------------------------------------- #
# Fused path: whole 2-layer forward in one VMEM-resident kernel (small graphs)
# --------------------------------------------------------------------------- #
def fused_gcn2_kernel(a_full_ref, a_rows_ref, xs_ref, dstn_ref, dstn_rows_ref,
                      srcn_ref, w1_ref, b1_ref, w2_ref, b2_ref, out_ref):
    # ---- layer 1 over ALL nodes (recomputed per row tile; tiny at fused sizes) ----
    agg1 = dstn_ref[...] * _adj_matmul(a_full_ref[...], xs_ref[...])
    h = jnp.dot(agg1, w1_ref[...], preferred_element_type=jnp.float32) + b1_ref[...]
    h = jnp.maximum(h, 0.0)
    # Fold layer-2's source norm into the hidden activation (row scale).
    # NOTE: padded rows of h equal relu(b1); they never leak because A's padded
    # columns are zero, so they contribute nothing to the layer-2 aggregation.
    hs = srcn_ref[...] * h
    # ---- layer 2 for this destination-row tile only ----
    agg2 = dstn_rows_ref[...] * _adj_matmul(a_rows_ref[...], hs)
    out = jnp.dot(agg2, w2_ref[...], preferred_element_type=jnp.float32) + b2_ref[...]
    out_ref[...] = out.astype(out_ref.dtype)


def _fused_forward(adj_bf, xs, dstn, srcn, w1, b1, w2, b2):
    n_pad = adj_bf.shape[0]
    f_in = xs.shape[1]
    h_p = w1.shape[1]
    f_out = w2.shape[1]
    tm = n_pad // 2  # 2 parallel row tiles -> both TensorCores busy on v7x

    est = (3 * n_pad * n_pad * 2                 # A (full + row slab, bf16)
           + 2 * n_pad * f_in * 4                # xs
           + 2 * tm * f_out * 4                  # out tile
           + 8 * n_pad * max(f_in, h_p, f_out) * 4   # in-kernel intermediates
           + 2 * (f_in * h_p + h_p * f_out) * 4)     # weights

    return pl.pallas_call(
        fused_gcn2_kernel,
        out_shape=jax.ShapeDtypeStruct((n_pad, f_out), jnp.float32),
        grid_spec=pltpu.PrefetchScalarGridSpec(
            num_scalar_prefetch=0,
            grid=(2,),
            in_specs=[
                pl.BlockSpec((n_pad, n_pad), lambda i: (0, 0)),  # A full (layer 1)
                pl.BlockSpec((tm, n_pad), lambda i: (i, 0)),     # A row slab (layer 2)
                pl.BlockSpec((n_pad, f_in), lambda i: (0, 0)),   # xs (src_norm folded)
                pl.BlockSpec((n_pad, 1), lambda i: (0, 0)),      # dst_norm (all rows)
                pl.BlockSpec((tm, 1), lambda i: (i, 0)),         # dst_norm (this tile)
                pl.BlockSpec((n_pad, 1), lambda i: (0, 0)),      # src_norm (layer 2)
                pl.BlockSpec((f_in, h_p), lambda i: (0, 0)),     # W1
                pl.BlockSpec((1, h_p), lambda i: (0, 0)),        # b1
                pl.BlockSpec((h_p, f_out), lambda i: (0, 0)),    # W2
                pl.BlockSpec((1, f_out), lambda i: (0, 0)),      # b2
            ],
            out_specs=pl.BlockSpec((tm, f_out), lambda i: (i, 0)),
        ),
        compiler_params=pltpu.CompilerParams(
            dimension_semantics=("parallel",),
            vmem_limit_bytes=_vmem_limit(est),
        ),
    )(adj_bf, adj_bf, xs, dstn, dstn, srcn, w1, b1, w2, b2)


# --------------------------------------------------------------------------- #
# Tiled path: one GraphConv layer with (row, K) reduction grid (large graphs)
# --------------------------------------------------------------------------- #
def graphconv_kernel(*refs, apply_relu, apply_out_scale, has_weight):
    it = iter(refs)
    dstn_ref = next(it)
    oscale_ref = next(it) if apply_out_scale else None
    a_ref = next(it)
    xs_ref = next(it)
    w_ref = next(it) if has_weight else None
    b_ref = next(it)
    out_ref = next(it)
    acc_ref = next(it)

    k = pl.program_id(1)

    @pl.when(k == 0)
    def _():
        acc_ref[...] = jnp.zeros_like(acc_ref)

    acc_ref[...] += _adj_matmul(a_ref[...], xs_ref[...])

    @pl.when(k == pl.num_programs(1) - 1)
    def _():
        h = dstn_ref[...] * acc_ref[...]
        if has_weight:
            h = jnp.dot(h, w_ref[...], preferred_element_type=jnp.float32)
        h = h + b_ref[...]
        if apply_relu:
            h = jnp.maximum(h, 0.0)
        if apply_out_scale:
            h = oscale_ref[...] * h
        out_ref[...] = h.astype(out_ref.dtype)


def graphconv_layer(adj_bf, xs, w, b, dst_norm, out_scale, *, apply_relu,
                    tm=512, tk=512):
    """One GraphConv layer.  `xs` already carries src_norm (row-scaled).  If
    `out_scale` is given, the output rows are multiplied by it (used to fold the
    NEXT layer's src_norm into this layer's output, so the next layer needs no
    per-step source scaling).  Aggregation runs at the narrower padded width:
    when f_in > f_out the wrapper pre-transforms (xs @ w) once in XLA."""
    n = adj_bf.shape[0]
    f_in = xs.shape[1]
    f_out = w.shape[1]

    has_weight = f_in <= f_out          # aggregate-first when input width is narrower
    if not has_weight:                  # transform-first: one O(N*f_in*f_out) pass
        xs = jnp.dot(xs, w)
        f_in = f_out

    tm = min(tm, n)
    tk = min(tk, n)
    assert n % tm == 0 and n % tk == 0
    grid = (n // tm, n // tk)
    apply_out_scale = out_scale is not None

    in_specs = [pl.BlockSpec((tm, 1), lambda i, k: (i, 0))]        # dst_norm
    args = [dst_norm]
    if apply_out_scale:
        in_specs.append(pl.BlockSpec((tm, 1), lambda i, k: (i, 0)))  # output row scale
        args.append(out_scale)
    in_specs += [pl.BlockSpec((tm, tk), lambda i, k: (i, k)),        # A (bf16)
                 pl.BlockSpec((tk, f_in), lambda i, k: (k, 0))]      # xs
    args += [adj_bf, xs]
    if has_weight:
        in_specs.append(pl.BlockSpec((f_in, f_out), lambda i, k: (0, 0)))  # W
        args.append(w)
    in_specs.append(pl.BlockSpec((1, f_out), lambda i, k: (0, 0)))         # b
    args.append(b)

    # Double-buffered VMEM footprint estimate (A, xs, out, acc, W/b, matmul temps).
    est = (2 * tm * tk * 2 + 2 * tk * f_in * 4 + 2 * tm * f_out * 4
           + tm * f_in * 4 + 2 * (f_in * f_out * 4 + f_out * 4)
           + 4 * max(tm, tk) * f_in * 4)

    kernel = functools.partial(graphconv_kernel, apply_relu=apply_relu,
                               apply_out_scale=apply_out_scale,
                               has_weight=has_weight)

    return pl.pallas_call(
        kernel,
        out_shape=jax.ShapeDtypeStruct((n, f_out), jnp.float32),
        grid_spec=pltpu.PrefetchScalarGridSpec(
            num_scalar_prefetch=0,
            grid=grid,
            in_specs=in_specs,
            out_specs=pl.BlockSpec((tm, f_out), lambda i, k: (i, 0)),
            scratch_shapes=[pltpu.VMEM((tm, f_in), jnp.float32)],
        ),
        compiler_params=pltpu.CompilerParams(
            dimension_semantics=("parallel", "arbitrary"),
            vmem_limit_bytes=_vmem_limit(est),
        ),
    )(*args)


# --------------------------------------------------------------------------- #
# Full forward pass
# --------------------------------------------------------------------------- #
def gcn2_forward(adj, feats, w1, b1, w2, b2, *, tm=512, tk=512):
    """Two-layer GCN: GraphConv -> ReLU -> GraphConv (DGL norm='both' semantics)."""
    n = adj.shape[0]
    in_feats = feats.shape[1]
    h_feats = w1.shape[1]
    f_in_p = _round_up(in_feats, LANES)
    h_p = _round_up(h_feats, LANES)

    n_fused = _round_up(n, 2 * LANES)           # 2 row tiles for megacore
    fuse = n_fused <= 512 and max(f_in_p, h_p) <= 512

    if fuse:
        n_pad = n_fused
    else:
        n_pad = _round_up(n, LANES)
        tm = min(tm, n_pad)
        n_pad = _round_up(n_pad, tm)
        tk = min(tk, n_pad)
        n_pad = _round_up(n_pad, tk)

    # Graph preprocessing: single f32 read of adj -> padded bf16 ({0,1} exact);
    # both degree vectors come from the bf16 copy with f32 accumulation.
    adj_bf = _pad2d(adj, n_pad, n_pad).astype(jnp.bfloat16)
    deg_in = jnp.sum(adj_bf, axis=1, keepdims=True, dtype=jnp.float32)
    deg_out = jnp.sum(adj_bf, axis=0, keepdims=True, dtype=jnp.float32).T
    dstn = jax.lax.rsqrt(jnp.maximum(deg_in, 1.0))   # padded rows -> norm 1.0
    srcn = jax.lax.rsqrt(jnp.maximum(deg_out, 1.0))

    x_p = _pad2d(feats.astype(jnp.float32), n_pad, f_in_p)
    xs1 = srcn * x_p                                  # fold layer-1 src_norm once
    w1_p = _pad2d(w1.astype(jnp.float32), f_in_p, h_p)
    b1_p = _pad2d(b1.reshape(1, -1).astype(jnp.float32), 1, h_p)
    w2_p = _pad2d(w2.astype(jnp.float32), h_p, f_in_p)
    b2_p = _pad2d(b2.reshape(1, -1).astype(jnp.float32), 1, f_in_p)

    if fuse:
        out = _fused_forward(adj_bf, xs1, dstn, srcn, w1_p, b1_p, w2_p, b2_p)
    else:
        # Layer 1 emits src_norm * relu(H) so layer 2 needs no source scaling.
        hs = graphconv_layer(adj_bf, xs1, w1_p, b1_p, dstn, srcn,
                             apply_relu=True, tm=tm, tk=tk)
        out = graphconv_layer(adj_bf, hs, w2_p, b2_p, dstn, None,
                              apply_relu=False, tm=tm, tk=tk)
    return out[:n, :in_feats]


def gcn2_reference(adj, feats, w1, b1, w2, b2):
    """Pure-JAX reference mirroring DGL GraphConv(norm='both') semantics."""
    dst_norm = jax.lax.rsqrt(jnp.maximum(adj.sum(1, keepdims=True), 1.0))
    src_norm = jax.lax.rsqrt(jnp.maximum(adj.sum(0, keepdims=True), 1.0))
    a_norm = adj * src_norm * dst_norm
    h = jnp.maximum(a_norm @ (feats @ w1) + b1.reshape(1, -1), 0.0)
    return a_norm @ (h @ w2) + b2.reshape(1, -1)


def glorot_uniform(key, shape):
    fan_in, fan_out = shape
    limit = jnp.sqrt(6.0 / (fan_in + fan_out))
    return jax.random.uniform(key, shape, jnp.float32, -limit, limit)


if __name__ == "__main__":
    def make_case(key, n, in_feats, h_feats, density=0.10):
        k_adj, k_x, k_w1, k_w2 = jax.random.split(key, 4)
        adj = (jax.random.uniform(k_adj, (n, n)) < density).astype(jnp.float32)
        adj = jnp.maximum(adj, jnp.eye(n, dtype=jnp.float32))     # self-loops
        feats = jax.random.normal(k_x, (n, in_feats), jnp.float32)
        w1 = glorot_uniform(k_w1, (in_feats, h_feats))
        b1 = jnp.zeros((1, h_feats), jnp.float32)
        w2 = glorot_uniform(k_w2, (h_feats, in_feats))
        b2 = jnp.zeros((1, in_feats), jnp.float32)
        return adj, feats, w1, b1, w2, b2

    k1, k2 = jax.random.split(jax.random.PRNGKey(0))
    fwd = jax.jit(gcn2_forward)

    # Case 1 (the module's test size): N=256 -> single fused VMEM-resident kernel,
    # 2 parallel row tiles.
    args1 = make_case(k1, 256, 8, 32)
    out1 = jax.block_until_ready(fwd(*args1))
    ref1 = gcn2_reference(*args1)
    assert out1.shape == (256, 8)
    assert jnp.allclose(out1, ref1, atol=1e-4, rtol=1e-4), \
        float(jnp.abs(out1 - ref1).max())

    # Case 2: larger graph -> tiled reduction path (tm=tk=512, grid (2,2)); layer 1
    # takes the transform-first branch (200 -> 16 feats), layer 2 aggregate-first.
    args2 = make_case(k2, 1024, 200, 16)
    out2 = jax.block_until_ready(fwd(*args2))
    ref2 = gcn2_reference(*args2)
    assert out2.shape == (1024, 200)
    assert jnp.allclose(out2, ref2, atol=2e-4, rtol=1e-3), \
        float(jnp.abs(out2 - ref2).max())

    print("KERNEL_OK")
</pallas_src>

<mosaic_0001>
module attributes {stable_mosaic.version = 11 : i64} {
  func.func @fused_gcn2_kernel(%arg0: i32, %arg1: memref<256x256xbf16, #tpu.memory_space<vmem>>, %arg2: memref<128x256xbf16, #tpu.memory_space<vmem>>, %arg3: memref<256x128xf32, #tpu.memory_space<vmem>>, %arg4: memref<256x1xf32, #tpu.memory_space<vmem>>, %arg5: memref<128x1xf32, #tpu.memory_space<vmem>>, %arg6: memref<256x1xf32, #tpu.memory_space<vmem>>, %arg7: memref<128x128xf32, #tpu.memory_space<vmem>>, %arg8: memref<1x128xf32, #tpu.memory_space<vmem>>, %arg9: memref<128x128xf32, #tpu.memory_space<vmem>>, %arg10: memref<1x128xf32, #tpu.memory_space<vmem>>, %arg11: memref<128x128xf32, #tpu.memory_space<vmem>>) attributes {dimension_semantics = [#tpu.dimension_semantics<parallel>], iteration_bounds = array<i64: 2>, scalar_prefetch = 0 : i64, scratch_operands = 0 : i64, tpu.core_type = #tpu.core_type<tc>, window_params = [{pipeline_mode = #tpu.pipeline_mode<synchronous>, transform_indices = @transform_0, window_bounds = array<i64: 256, 256>}, {transform_indices = @transform_1, window_bounds = array<i64: 128, 256>}, {pipeline_mode = #tpu.pipeline_mode<synchronous>, transform_indices = @transform_2, window_bounds = array<i64: 256, 128>}, {pipeline_mode = #tpu.pipeline_mode<synchronous>, transform_indices = @transform_3, window_bounds = array<i64: 256, 1>}, {transform_indices = @transform_4, window_bounds = array<i64: 128, 1>}, {pipeline_mode = #tpu.pipeline_mode<synchronous>, transform_indices = @transform_5, window_bounds = array<i64: 256, 1>}, {pipeline_mode = #tpu.pipeline_mode<synchronous>, transform_indices = @transform_6, window_bounds = array<i64: 128, 128>}, {pipeline_mode = #tpu.pipeline_mode<synchronous>, transform_indices = @transform_7, window_bounds = array<i64: 1, 128>}, {pipeline_mode = #tpu.pipeline_mode<synchronous>, transform_indices = @transform_8, window_bounds = array<i64: 128, 128>}, {pipeline_mode = #tpu.pipeline_mode<synchronous>, transform_indices = @transform_9, window_bounds = array<i64: 1, 128>}, {transform_indices = @transform_10, window_bounds = array<i64: 128, 128>}]} {
    %c0 = arith.constant 0 : index
    %c0_0 = arith.constant 0 : index
    %0 = vector.load %arg4[%c0, %c0_0] : memref<256x1xf32, #tpu.memory_space<vmem>>, vector<256x1xf32>
    %c0_1 = arith.constant 0 : index
    %c0_2 = arith.constant 0 : index
    %1 = vector.load %arg1[%c0_1, %c0_2] : memref<256x256xbf16, #tpu.memory_space<vmem>>, vector<256x256xbf16>
    %c0_3 = arith.constant 0 : index
    %c0_4 = arith.constant 0 : index
    %2 = vector.load %arg3[%c0_3, %c0_4] : memref<256x128xf32, #tpu.memory_space<vmem>>, vector<256x128xf32>
    %3 = arith.truncf %2 : vector<256x128xf32> to vector<256x128xbf16>
    %4 = arith.extf %3 : vector<256x128xbf16> to vector<256x128xf32>
    %5 = arith.subf %2, %4 : vector<256x128xf32>
    %6 = arith.truncf %5 : vector<256x128xf32> to vector<256x128xbf16>
    %cst = arith.constant dense<0.000000e+00> : vector<256x128xf32>
    %7 = tpu.matmul %1, %3, %cst {dimension_numbers = #tpu.dot_dimension_numbers<[1], [0], [0], [1], [0, 0, 1, 1], [], []>} : vector<256x256xbf16>, vector<256x128xbf16>, vector<256x128xf32> -> vector<256x128xf32>
    %cst_5 = arith.constant dense<0.000000e+00> : vector<256x128xf32>
    %8 = tpu.matmul %1, %6, %cst_5 {dimension_numbers = #tpu.dot_dimension_numbers<[1], [0], [0], [1], [0, 0, 1, 1], [], []>} : vector<256x256xbf16>, vector<256x128xbf16>, vector<256x128xf32> -> vector<256x128xf32>
    %9 = arith.addf %7, %8 : vector<256x128xf32>
    %10 = vector.broadcast %0 : vector<256x1xf32> to vector<256x128xf32>
    %11 = arith.mulf %10, %9 : vector<256x128xf32>
    %c0_6 = arith.constant 0 : index
    %c0_7 = arith.constant 0 : index
    %12 = vector.load %arg7[%c0_6, %c0_7] : memref<128x128xf32, #tpu.memory_space<vmem>>, vector<128x128xf32>
    %cst_8 = arith.constant dense<0.000000e+00> : vector<256x128xf32>
    %13 = tpu.matmul %11, %12, %cst_8 {dimension_numbers = #tpu.dot_dimension_numbers<[1], [0], [0], [1], [0, 0, 1, 1], [], []>} : vector<256x128xf32>, vector<128x128xf32>, vector<256x128xf32> -> vector<256x128xf32>
    %c0_9 = arith.constant 0 : index
    %c0_10 = arith.constant 0 : index
    %14 = vector.load %arg8[%c0_9, %c0_10] : memref<1x128xf32, #tpu.memory_space<vmem>>, vector<1x128xf32>
    %15 = vector.broadcast %14 : vector<1x128xf32> to vector<256x128xf32>
    %16 = arith.addf %13, %15 : vector<256x128xf32>
    %cst_11 = arith.constant 0.000000e+00 : f32
    %17 = vector.broadcast %cst_11 : f32 to vector<256x128xf32>
    %18 = arith.maximumf %16, %17 : vector<256x128xf32>
    %c0_12 = arith.constant 0 : index
    %c0_13 = arith.constant 0 : index
    %19 = vector.load %arg6[%c0_12, %c0_13] : memref<256x1xf32, #tpu.memory_space<vmem>>, vector<256x1xf32>
    %20 = vector.broadcast %19 : vector<256x1xf32> to vector<256x128xf32>
    %21 = arith.mulf %20, %18 : vector<256x128xf32>
    %c0_14 = arith.constant 0 : index
    %c0_15 = arith.constant 0 : index
    %22 = vector.load %arg5[%c0_14, %c0_15] : memref<128x1xf32, #tpu.memory_space<vmem>>, vector<128x1xf32>
    %c0_16 = arith.constant 0 : index
    %c0_17 = arith.constant 0 : index
    %23 = vector.load %arg2[%c0_16, %c0_17] : memref<128x256xbf16, #tpu.memory_space<vmem>>, vector<128x256xbf16>
    %24 = arith.truncf %21 : vector<256x128xf32> to vector<256x128xbf16>
    %25 = arith.extf %24 : vector<256x128xbf16> to vector<256x128xf32>
    %26 = arith.subf %21, %25 : vector<256x128xf32>
    %27 = arith.truncf %26 : vector<256x128xf32> to vector<256x128xbf16>
    %cst_18 = arith.constant dense<0.000000e+00> : vector<128x128xf32>
    %28 = tpu.matmul %23, %24, %cst_18 {dimension_numbers = #tpu.dot_dimension_numbers<[1], [0], [0], [1], [0, 0, 1, 1], [], []>} : vector<128x256xbf16>, vector<256x128xbf16>, vector<128x128xf32> -> vector<128x128xf32>
    %cst_19 = arith.constant dense<0.000000e+00> : vector<128x128xf32>
    %29 = tpu.matmul %23, %27, %cst_19 {dimension_numbers = #tpu.dot_dimension_numbers<[1], [0], [0], [1], [0, 0, 1, 1], [], []>} : vector<128x256xbf16>, vector<256x128xbf16>, vector<128x128xf32> -> vector<128x128xf32>
    %30 = arith.addf %28, %29 : vector<128x128xf32>
    %31 = vector.broadcast %22 : vector<128x1xf32> to vector<128x128xf32>
    %32 = arith.mulf %31, %30 : vector<128x128xf32>
    %c0_20 = arith.constant 0 : index
    %c0_21 = arith.constant 0 : index
    %33 = vector.load %arg9[%c0_20, %c0_21] : memref<128x128xf32, #tpu.memory_space<vmem>>, vector<128x128xf32>
    %cst_22 = arith.constant dense<0.000000e+00> : vector<128x128xf32>
    %34 = tpu.matmul %32, %33, %cst_22 {dimension_numbers = #tpu.dot_dimension_numbers<[1], [0], [0], [1], [0, 0, 1, 1], [], []>} : vector<128x128xf32>, vector<128x128xf32>, vector<128x128xf32> -> vector<128x128xf32>
    %c0_23 = arith.constant 0 : index
    %c0_24 = arith.constant 0 : index
    %35 = vector.load %arg10[%c0_23, %c0_24] : memref<1x128xf32, #tpu.memory_space<vmem>>, vector<1x128xf32>
    %36 = vector.broadcast %35 : vector<1x128xf32> to vector<128x128xf32>
    %37 = arith.addf %34, %36 : vector<128x128xf32>
    %c0_25 = arith.constant 0 : index
    %c0_26 = arith.constant 0 : index
    %38 = vector.load %arg11[%c0_25, %c0_26] : memref<128x128xf32, #tpu.memory_space<vmem>>, vector<128x128xf32>
    tpu.vector_store %arg11[%c0_25, %c0_26], %37 {strides = array<i32>} : memref<128x128xf32, #tpu.memory_space<vmem>>, vector<128x128xf32>,
    return
  }
  func.func @transform_0(%arg0: i32) -> (i32, i32) {
    %c0_i32 = arith.constant 0 : i32
    %c0_i32_0 = arith.constant 0 : i32
    %c0_i32_1 = arith.constant 0 : i32
    return %c0_i32, %c0_i32_0 : i32, i32
  }
  func.func @transform_1(%arg0: i32) -> (i32, i32) {
    %c0_i32 = arith.constant 0 : i32
    %c0_i32_0 = arith.constant 0 : i32
    return %arg0, %c0_i32 : i32, i32
  }
  func.func @transform_2(%arg0: i32) -> (i32, i32) {
    %c0_i32 = arith.constant 0 : i32
    %c0_i32_0 = arith.constant 0 : i32
    %c0_i32_1 = arith.constant 0 : i32
    return %c0_i32, %c0_i32_0 : i32, i32
  }
  func.func @transform_3(%arg0: i32) -> (i32, i32) {
    %c0_i32 = arith.constant 0 : i32
    %c0_i32_0 = arith.constant 0 : i32
    %c0_i32_1 = arith.constant 0 : i32
    return %c0_i32, %c0_i32_0 : i32, i32
  }
  func.func @transform_4(%arg0: i32) -> (i32, i32) {
    %c0_i32 = arith.constant 0 : i32
    %c0_i32_0 = arith.constant 0 : i32
    return %arg0, %c0_i32 : i32, i32
  }
  func.func @transform_5(%arg0: i32) -> (i32, i32) {
    %c0_i32 = arith.constant 0 : i32
    %c0_i32_0 = arith.constant 0 : i32
    %c0_i32_1 = arith.constant 0 : i32
    return %c0_i32, %c0_i32_0 : i32, i32
  }
  func.func @transform_6(%arg0: i32) -> (i32, i32) {
    %c0_i32 = arith.constant 0 : i32
    %c0_i32_0 = arith.constant 0 : i32
    %c0_i32_1 = arith.constant 0 : i32
    return %c0_i32, %c0_i32_0 : i32, i32
  }
  func.func @transform_7(%arg0: i32) -> (i32, i32) {
    %c0_i32 = arith.constant 0 : i32
    %c0_i32_0 = arith.constant 0 : i32
    %c0_i32_1 = arith.constant 0 : i32
    return %c0_i32, %c0_i32_0 : i32, i32
  }
  func.func @transform_8(%arg0: i32) -> (i32, i32) {
    %c0_i32 = arith.constant 0 : i32
    %c0_i32_0 = arith.constant 0 : i32
    %c0_i32_1 = arith.constant 0 : i32
    return %c0_i32, %c0_i32_0 : i32, i32
  }
  func.func @transform_9(%arg0: i32) -> (i32, i32) {
    %c0_i32 = arith.constant 0 : i32
    %c0_i32_0 = arith.constant 0 : i32
    %c0_i32_1 = arith.constant 0 : i32
    return %c0_i32, %c0_i32_0 : i32, i32
  }
  func.func @transform_10(%arg0: i32) -> (i32, i32) {
    %c0_i32 = arith.constant 0 : i32
    %c0_i32_0 = arith.constant 0 : i32
    return %arg0, %c0_i32 : i32, i32
  }
}

</mosaic_0001>

<bundles_post_ra>
// kernel: gcn2_forward.1
= control target key start
LH: loop header
LB: loop body
LE: loop exit
PB: predicated region body
PF: predicated region fallthrough
CT: control target
= control target key end

     0   :  { %s3289_s13 = smov 0   ;;  %s4137_s0 = inlined_call_operand.vmem [shape: bf16[256,256], index: 0, kind: input, shape index: {}, may-alias: {0,1}]   ;;  %s4138_s1 = inlined_call_operand.vmem [shape: bf16[256,256], index: 1, kind: input, shape index: {}, may-alias: {0,1}]   ;;  %s4139_s2 = inlined_call_operand.vmem [shape: f32[256,128], index: 2, kind: input, shape index: {}]   ;;  %s4140_s3 = inlined_call_operand.vmem [shape: f32[256,1], index: 3, kind: input, shape index: {}, may-alias: {3,4}]   ;;  %s4141_s4 = inlined_call_operand.vmem [shape: f32[256,1], index: 4, kind: input, shape index: {}, may-alias: {3,4}]   ;;  %s4142_s5 = inlined_call_operand.vmem [shape: f32[256,1], index: 5, kind: input, shape index: {}]   ;;  %s4143_s6 = inlined_call_operand.vmem [shape: f32[128,128], index: 6, kind: input, shape index: {}]   ;;  %s4144_s7 = inlined_call_operand.vmem [shape: f32[1,128], index: 7, kind: input, shape index: {}]   ;;  %s4145_s8 = inlined_call_operand.vmem [shape: f32[128,128], index: 8, kind: input, shape index: {}]   ;;  %s4146_s9 = inlined_call_operand.vmem [shape: f32[1,128], index: 9, kind: input, shape index: {}]   ;;  %s4147_s10 = inlined_call_operand.vmem [shape: f32[256,128], index: 10, kind: output, shape index: {}]  }
   0x1 LB: > { %s2509_s14 = sadd.s32 4294967295, %s3231_s13   ;;  %p2513_p0 = scmp.ge.s32.totalorder %s3231_s13, 1  ;;  %s3231_s13 = sphi %s3289_s13, %s20_s13  }
   0x2   : > { %p325_p1 = scmp.lt.s32.totalorder %s3231_s13, 3 }
   0x4   : > { %p326_p2 = pnand %p2513_p0, %p325_p1 }
   0x6   : > { %329 = sbr.rel (%p326_p2) target bundleno = 1077 (0x435), region = 60 }
   0xb   : > { %v483_v0 = vld [vmem:[%s4139_s2 + $0xf0] sm:$0xff]  ;;  %v484_v1 = vld [vmem:[%s4139_s2 + $0xf8] sm:$0xff]  ;;  %v481_v5 = vld [vmem:[%s4139_s2 + $0xe0] sm:$0xff]  ;;  %v3233_v7 = vmov 0   ;;  %s2514_s17 = sshll.u32 %s2509_s14, 4 }
   0xc   : > { %v467_v2 = vld [vmem:[%s4139_s2 + $0x70] sm:$0xff]  ;;  %v500_v3 = vpack.c.bf16 %v484_v1, %v483_v0  ;;  %v468_v4 = vld [vmem:[%s4139_s2 + $0x78] sm:$0xff]  ;;  %v482_v6 = vld [vmem:[%s4139_s2 + $0xe8] sm:$0xff]  ;;  %3151 = vset.pattern.permute.xlu0 %v3233_v7  ;;  %3152 = vset.pattern.permute.xlu1 %v3233_v7  ;;  %p370_p3 = scmp.lt.s32.totalorder %s2514_s17, 31 }
   0xd   : > { %v492_v8 = vpack.c.bf16 %v468_v4, %v467_v2  ;;  %v499_v9 = vpack.c.bf16 %v482_v6, %v481_v5  ;;  %v465_v10 = vld [vmem:[%s4139_s2 + $0x60] sm:$0xff]  ;;  %v466_v11 = vld [vmem:[%s4139_s2 + $0x68] sm:$0xff]  ;;  %v479_v12 = vld [vmem:[%s4139_s2 + $0xd0] sm:$0xff] }
   0xe   : > { %2686 = vmatprep.subr.bf16.mxu1 %v500_v3  ;;  %v491_v13 = vpack.c.bf16 %v466_v11, %v465_v10  ;;  %v531_v14 = vunpack.c.l.bf16 %v500_v3  ;;  %v532_v15 = vunpack.c.h.bf16 %v500_v3  ;;  %v480_v16 = vld [vmem:[%s4139_s2 + $0xd8] sm:$0xff]  ;;  %v463_v17 = vld [vmem:[%s4139_s2 + $0x50] sm:$0xff]  ;;  %v3336_v23 = vld [vmem:[%s4139_s2 + $0xc0] sm:$0xff]  ;;  %s4178_s17 = smov (!%p370_p3, %s2514_s17), 31 }
   0xf   : > { %v464_v18 = vld [vmem:[%s4139_s2 + $0x58] sm:$0xff]  ;;  %2687 = vmatpush3.bf16.msra.mxu1 %v492_v8  ;;  %v515_v19 = vunpack.c.l.bf16 %v492_v8  ;;  %v516_v20 = vunpack.c.h.bf16 %v492_v8  ;;  %v498_v21 = vpack.c.bf16 %v480_v16, %v479_v12  ;;  %v3341_v24 = vld [vmem:[%s4139_s2 + $0xc8] sm:$0xff]  ;;  %v529_v27 = vunpack.c.l.bf16 %v499_v9  ;;  %v3346_v29 = vld [vmem:[%s4139_s2 + $0x40] sm:$0xff]  ;;  %s3771_s18 = sshll.u32 %s4178_s17, 3 }
  0x10   : > { %v490_v22 = vpack.c.bf16 %v464_v18, %v463_v17  ;;  %2688 = vmatprep.subr.bf16.mxu1 %v499_v9  ;;  %v563_v25 = vsub.f32 %v483_v0, %v531_v14  ;;  %v564_v26 = vsub.f32 %v484_v1, %v532_v15  ;;  %v530_v28 = vunpack.c.h.bf16 %v499_v9  ;;  %v3351_v30 = vld [vmem:[%s4139_s2 + $0x48] sm:$0xff]  ;;  %v3356_v35 = vld [vmem:[%s4139_s2 + $0xb0] sm:$0xff]  ;;  %v389_v36 = vld [vmem:[%s4140_s3] sm:$0xff]  ;;  %s3783_s24 = scalar_lea.vmem %s4141_s4, %s3771_s18  ;;  %s3917_s14 = scalar_lea.vmem %s4138_s1, %s3771_s18 }
  0x11   : > { %v547_v31 = vsub.f32 %v467_v2, %v515_v19  ;;  %v548_v32 = vsub.f32 %v468_v4, %v516_v20  ;;  %v513_v33 = vunpack.c.l.bf16 %v491_v13  ;;  %v514_v34 = vunpack.c.h.bf16 %v491_v13  ;;  %v3366_v41 = vld [vmem:[%s4139_s2 + $0xb8] sm:$0xff]  ;;  %v3371_v42 = vld [vmem:[%s4139_s2 + $0x30] sm:$0xff]  ;;  %1065 = vperm.xlu0 %3151, %v389_v36   ;;  %v390_v49 = vld [vmem:[%s4140_s3 + $0x8] sm:$0xff]  ;;  %s4116_s17 = scalar_lea.vmem %s4147_s10, %s3771_s18 }
  0x12   : > { %v580_v37 = vpack.c.bf16 %v564_v26, %v563_v25  ;;  %v561_v38 = vsub.f32 %v481_v5, %v529_v27  ;;  %v562_v39 = vsub.f32 %v482_v6, %v530_v28  ;;  %v497_v40 = vpack.c.bf16 %v3341_v24, %v3336_v23  ;;  %v3376_v43 = vld [vmem:[%s4139_s2 + $0x38] sm:$0xff]  ;;  %v391_v48 = vld [vmem:[%s4140_s3 + $0x10] sm:$0xff]  ;;  %v3389_v54 = vld [vmem:[%s4139_s2 + $0xa0] sm:$0xff] }
  0x13   : > { %2689 = vmatpush3.bf16.msra.mxu1 %v491_v13  ;;  %v572_v44 = vpack.c.bf16 %v548_v32, %v547_v31  ;;  %v545_v45 = vsub.f32 %v465_v10, %v513_v33  ;;  %v546_v46 = vsub.f32 %v466_v11, %v514_v34  ;;  %v489_v47 = vpack.c.bf16 %v3351_v30, %v3346_v29  ;;  %v3398_v59 = vld [vmem:[%s4139_s2 + $0xa8] sm:$0xff]  ;;  %v3403_v60 = vld [vmem:[%s4139_s2 + $0x20] sm:$0xff]  ;;  %v3413_v2 = vld [vmem:[%s4139_s2 + $0x90] sm:$0xff] }
  0x14   : > { %2574 = vmatprep.subr.bf16.mxu0 %v580_v37  ;;  %2690 = vmatprep.subr.bf16.mxu1 %v498_v21  ;;  %v579_v50 = vpack.c.bf16 %v562_v39, %v561_v38  ;;  %v527_v51 = vunpack.c.l.bf16 %v498_v21  ;;  %v528_v52 = vunpack.c.h.bf16 %v498_v21  ;;  %v511_v53 = vunpack.c.l.bf16 %v490_v22  ;;  %v3408_v61 = vld [vmem:[%s4139_s2 + $0x28] sm:$0xff]  ;;  %v3418_v7 = vld [vmem:[%s4139_s2 + $0x98] sm:$0xff]  ;;  %v3423_v8 = vld [vmem:[%s4139_s2 + $0x10] sm:$0xff] }
  0x15   : > { %2575 = vmatpush3.bf16.msra.mxu0 %v572_v44  ;;  %v571_v55 = vpack.c.bf16 %v546_v46, %v545_v45  ;;  %v512_v56 = vunpack.c.h.bf16 %v490_v22  ;;  %v496_v57 = vpack.c.bf16 %v3366_v41, %v3356_v35  ;;  %v488_v58 = vpack.c.bf16 %v3376_v43, %v3371_v42  ;;  %1075 = vperm.xlu1 %3152, %v391_v48   ;;  %v392_v9 = vld [vmem:[%s4140_s3 + $0x18] sm:$0xff]  ;;  %v469_v28 = vld [vmem:[%s4139_s2 + $0x80] sm:$0xff]  ;;  %v394_v39 = vld [vmem:[%s4140_s3 + $0x28] sm:$0xff] }
  0x16   : > { %2576 = vmatprep.subr.bf16.mxu0 %v579_v50  ;;  %v559_v62 = vsub.f32 %v479_v12, %v527_v51  ;;  %v560_v63 = vsub.f32 %v480_v16, %v528_v52  ;;  %v543_v0 = vsub.f32 %v463_v17, %v511_v53  ;;  %v525_v1 = vunpack.c.l.bf16 %v497_v40  ;;  %1070 = vperm.xlu0 %3151, %v390_v49   ;;  %v3436_v14 = vld [vmem:[%s4139_s2 + $0x18] sm:$0xff] }
  0x17   : > { %2691 = vmatpush3.bf16.msra.mxu1 %v490_v22  ;;  %v544_v3 = vsub.f32 %v464_v18, %v512_v56  ;;  %v526_v4 = vunpack.c.h.bf16 %v497_v40  ;;  %v509_v5 = vunpack.c.l.bf16 %v489_v47  ;;  %v510_v6 = vunpack.c.h.bf16 %v489_v47  ;;  %v396_v56 = vld [vmem:[%s4140_s3 + $0x38] sm:$0xff] }
  0x18   : > { %2692 = vmatprep.subr.bf16.mxu1 %v497_v40  ;;  %v578_v10 = vpack.c.bf16 %v560_v63, %v559_v62  ;;  %v557_v11 = vsub.f32 %v3336_v23, %v525_v1  ;;  %v495_v12 = vpack.c.bf16 %v3398_v59, %v3389_v54  ;;  %v487_v13 = vpack.c.bf16 %v3408_v61, %v3403_v60  ;;  %v393_v23 = vld [vmem:[%s4140_s3 + $0x20] sm:$0xff] }
  0x19   : > { %2577 = vmatpush3.bf16.msra.mxu0 %v571_v55  ;;  %v570_v15 = vpack.c.bf16 %v544_v3, %v543_v0  ;;  %v558_v16 = vsub.f32 %v3341_v24, %v526_v4  ;;  %v541_v17 = vsub.f32 %v3346_v29, %v509_v5  ;;  %v542_v18 = vsub.f32 %v3351_v30, %v510_v6  ;;  %v470_v29 = vld [vmem:[%s4139_s2 + $0x88] sm:$0xff] }
  0x1a   : > { %2578 = vmatprep.subr.bf16.mxu0 %v578_v10  ;;  %v523_v19 = vunpack.c.l.bf16 %v496_v57  ;;  %v524_v20 = vunpack.c.h.bf16 %v496_v57  ;;  %v507_v21 = vunpack.c.l.bf16 %v488_v58  ;;  %v508_v22 = vunpack.c.h.bf16 %v488_v58  ;;  %1080 = vperm.xlu1 %3152, %v392_v9   ;;  %v398_v3 = vld [vmem:[%s4140_s3 + $0x48] sm:$0xff] }
  0x1b   : > { %2693 = vmatpush3.bf16.msra.mxu1 %v489_v47  ;;  %v577_v25 = vpack.c.bf16 %v558_v16, %v557_v11  ;;  %v569_v26 = vpack.c.bf16 %v542_v18, %v541_v17  ;;  %v494_v24 = vpack.c.bf16 %v3418_v7, %v3413_v2  ;;  %v486_v27 = vpack.c.bf16 %v3436_v14, %v3423_v8  ;;  %v3155_v47 = vld [vmem:[%s4137_s0 + $0x4] ss:$8 sps:$4 sm:$0xff]   ;;  %v400_v11 = vld [vmem:[%s4140_s3 + $0x58] sm:$0xff]  ;;  %v403_v18 = vld [vmem:[%s4140_s3 + $0x70] sm:$0xff] }
  0x1c   : > { %2694 = vmatprep.subr.bf16.mxu1 %v496_v57  ;;  %v555_v30 = vsub.f32 %v3356_v35, %v523_v19  ;;  %v556_v31 = vsub.f32 %v3366_v41, %v524_v20  ;;  %v539_v32 = vsub.f32 %v3371_v42, %v507_v21  ;;  %v540_v33 = vsub.f32 %v3376_v43, %v508_v22  ;;  %v453_v35 = vld [vmem:[%s4139_s2] sm:$0xff]  ;;  %v454_v41 = vld [vmem:[%s4139_s2 + $0x8] sm:$0xff]  ;;  %v395_v42 = vld [vmem:[%s4140_s3 + $0x30] sm:$0xff] }
  0x1d   : > { %2579 = vmatpush3.bf16.msra.mxu0 %v570_v15  ;;  %1085 = vperm.xlu0 %3151, %v393_v23   ;;  %v521_v34 = vunpack.c.l.bf16 %v495_v12  ;;  %v522_v36 = vunpack.c.h.bf16 %v495_v12  ;;  %v505_v37 = vunpack.c.l.bf16 %v487_v13  ;;  %v506_v38 = vunpack.c.h.bf16 %v487_v13  ;;  %v3156_v15 = vld [vmem:[%s4137_s0 + $0x14] ss:$8 sps:$4 sm:$0xff]   ;;  %v402_v17 = vld [vmem:[%s4140_s3 + $0x68] sm:$0xff]  ;;  %v3158_v20 = vld [vmem:[%s4137_s0 + $0x10] ss:$8 sps:$4 sm:$0xff]  }
  0x1e   : > { %2580 = vmatprep.subr.bf16.mxu0 %v577_v25  ;;  %v576_v40 = vpack.c.bf16 %v556_v31, %v555_v30  ;;  %v493_v44 = vpack.c.bf16 %v470_v29, %v469_v28  ;;  %v568_v43 = vpack.c.bf16 %v540_v33, %v539_v32  ;;  %1090 = vperm.xlu1 %3152, %v394_v39   ;;  %v519_v50 = vunpack.c.l.bf16 %v494_v24  ;;  %v404_v19 = vld [vmem:[%s4140_s3 + $0x78] sm:$0xff]  ;;  %v405_v21 = vld [vmem:[%s4140_s3 + $0x80] sm:$0xff]  ;;  %v406_v23 = vld [vmem:[%s4140_s3 + $0x88] sm:$0xff] }
  0x1f   : > { %2695 = vmatpush3.bf16.msra.mxu1 %v488_v58  ;;  %v553_v45 = vsub.f32 %v3389_v54, %v521_v34  ;;  %v554_v46 = vsub.f32 %v3398_v59, %v522_v36  ;;  %v537_v48 = vsub.f32 %v3403_v60, %v505_v37  ;;  %v538_v49 = vsub.f32 %v3408_v61, %v506_v38  ;;  %v397_v59 = vld [vmem:[%s4140_s3 + $0x40] sm:$0xff]  ;;  %v407_v25 = vld [vmem:[%s4140_s3 + $0x90] sm:$0xff]  ;;  %v412_v31 = vld [vmem:[%s4140_s3 + $0xb8] sm:$0xff] }
  0x20   : > { %2696 = vmatprep.subr.bf16.mxu1 %v495_v12  ;;  %v520_v51 = vunpack.c.h.bf16 %v494_v24  ;;  %v485_v53 = vpack.c.bf16 %v454_v41, %v453_v35  ;;  %v503_v55 = vunpack.c.l.bf16 %v486_v27  ;;  %v504_v54 = vunpack.c.h.bf16 %v486_v27  ;;  %934 = vmatprep.mubr.bf16.mxu1 %v3155_v47  ;;  %v3153_v12 = vld [vmem:[%s4137_s0] ss:$8 sps:$4 sm:$0xff]   ;;  %v3159_v22 = vld [vmem:[%s4137_s0 + $0x24] ss:$8 sps:$4 sm:$0xff]   ;;  %v411_v30 = vld [vmem:[%s4140_s3 + $0xb0] sm:$0xff] }
  0x21   : > { %2581 = vmatpush3.bf16.msra.mxu0 %v569_v26  ;;  %v575_v52 = vpack.c.bf16 %v554_v46, %v553_v45  ;;  %1095 = vperm.xlu0 %3151, %v395_v42   ;;  %v551_v57 = vsub.f32 %v3413_v2, %v519_v50  ;;  %v517_v60 = vunpack.c.l.bf16 %v493_v44  ;;  %v518_v61 = vunpack.c.h.bf16 %v493_v44  ;;  %v408_v26 = vld [vmem:[%s4140_s3 + $0x98] sm:$0xff]  ;;  %v413_v33 = vld [vmem:[%s4140_s3 + $0xc0] sm:$0xff]  ;;  %v414_v36 = vld [vmem:[%s4140_s3 + $0xc8] sm:$0xff] }
  0x22   : > { %2582 = vmatprep.subr.bf16.mxu0 %v576_v40  ;;  %v552_v58 = vsub.f32 %v3418_v7, %v520_v51  ;;  %v567_v62 = vpack.c.bf16 %v538_v49, %v537_v48  ;;  %1100 = vperm.xlu1 %3152, %v396_v56   ;;  %v535_v63 = vsub.f32 %v3423_v8, %v503_v55  ;;  %v501_v1 = vunpack.c.l.bf16 %v485_v53  ;;  %v399_v7 = vld [vmem:[%s4140_s3 + $0x50] sm:$0xff]  ;;  %v3165_v34 = vld [vmem:[%s4137_s0 + $0x44] ss:$8 sps:$4 sm:$0xff]   ;;  %v416_v38 = vld [vmem:[%s4140_s3 + $0xd8] sm:$0xff] }
  0x23   : > { %2697 = vmatpush3.bf16.msra.mxu1 %v487_v13  ;;  %v536_v0 = vsub.f32 %v3436_v14, %v504_v54  ;;  %v502_v2 = vunpack.c.h.bf16 %v485_v53  ;;  %v549_v5 = vsub.f32 %v469_v28, %v517_v60  ;;  %v550_v6 = vsub.f32 %v470_v29, %v518_v61  ;;  %773 = vmatprep.mubr.bf16.mxu0 %v3155_v47  ;;  %v401_v14 = vld [vmem:[%s4140_s3 + $0x60] sm:$0xff]  ;;  %v3162_v28 = vld [vmem:[%s4137_s0 + $0x34] ss:$8 sps:$4 sm:$0xff]   ;;  %v410_v29 = vld [vmem:[%s4140_s3 + $0xa8] sm:$0xff] }
  0x24   : > { %2698 = vmatprep.subr.bf16.mxu1 %v494_v24  ;;  %v574_v4 = vpack.c.bf16 %v552_v58, %v551_v57  ;;  %v533_v9 = vsub.f32 %v453_v35, %v501_v1  ;;  %v3161_v24 = vld [vmem:[%s4137_s0 + $0x20] ss:$8 sps:$4 sm:$0xff]   ;;  %v3164_v32 = vld [vmem:[%s4137_s0 + $0x30] ss:$8 sps:$4 sm:$0xff]   ;;  %v3171_v46 = vld [vmem:[%s4137_s0 + $0x64] ss:$8 sps:$4 sm:$0xff]  }
  0x25   : > { %2583 = vmatpush3.bf16.msra.mxu0 %v568_v43  ;;  %1105 = vperm.xlu0 %3151, %v397_v59   ;;  %v566_v8 = vpack.c.bf16 %v536_v0, %v535_v63  ;;  %v534_v10 = vsub.f32 %v454_v41, %v502_v2  ;;  %v573_v13 = vpack.c.bf16 %v550_v6, %v549_v5  ;;  %v415_v37 = vld [vmem:[%s4140_s3 + $0xd0] sm:$0xff]  ;;  %v3167_v39 = vld [vmem:[%s4137_s0 + $0x40] ss:$8 sps:$4 sm:$0xff]   ;;  %v420_v42 = vld [vmem:[%s4140_s3 + $0xf8] sm:$0xff] }
  0x26   : > { %2584 = vmatprep.subr.bf16.mxu0 %v575_v52  ;;  %1110 = vperm.xlu1 %3152, %v398_v3   ;;  %v417_v40 = vld [vmem:[%s4140_s3 + $0xe0] sm:$0xff]  ;;  %v418_v35 = vld [vmem:[%s4140_s3 + $0xe8] sm:$0xff]  ;;  %v419_v41 = vld [vmem:[%s4140_s3 + $0xf0] sm:$0xff] }
  0x27   : > { %2699 = vmatpush3.bf16.msra.mxu1 %v486_v27  ;;  %v565_v16 = vpack.c.bf16 %v534_v10, %v533_v9  ;;  %v409_v27 = vld [vmem:[%s4140_s3 + $0xa0] sm:$0xff]  ;;  %v3170_v43 = vld [vmem:[%s4137_s0 + $0x50] ss:$8 sps:$4 sm:$0xff]   ;;  %v1268_v51 = vld [vmem:[%s4143_s6 + $0x68] sm:$0xff] }
  0x28   : > { %2700 = vmatprep.subr.bf16.mxu1 %v493_v44  ;;  %v3168_v44 = vld [vmem:[%s4137_s0 + $0x54] ss:$8 sps:$4 sm:$0xff]   ;;  %v1563_v55 = vld [vmem:[%s4142_s5 + $0xe0] sm:$0xff]  ;;  %v1564_v57 = vld [vmem:[%s4142_s5 + $0xe8] sm:$0xff] }
  0x29   : > { %2585 = vmatpush3.bf16.msra.mxu0 %v567_v62  ;;  %1115 = vperm.xlu0 %3151, %v399_v7   ;;  %v1565_v45 = vld [vmem:[%s4142_s5 + $0xf0] sm:$0xff]  ;;  %v1270_v47 = vld [vmem:[%s4143_s6 + $0x78] sm:$0xff]  ;;  %v1267_v56 = vld [vmem:[%s4143_s6 + $0x60] sm:$0xff] }
  0x2a   : > { %2586 = vmatprep.subr.bf16.mxu0 %v574_v4  ;;  %1120 = vperm.xlu1 %3152, %v400_v11   ;;  %v1566_v48 = vld [vmem:[%s4142_s5 + $0xf8] sm:$0xff]  ;;  %v1549_v49 = vld [vmem:[%s4142_s5 + $0x70] sm:$0xff]  ;;  %v1547_v58 = vld [vmem:[%s4142_s5 + $0x60] sm:$0xff] }
  0x2b   : > { %2701 = vmatpush3.bf16.msra.mxu1 %v485_v53  ;;  %v1269_v50 = vld [vmem:[%s4143_s6 + $0x70] sm:$0xff]  ;;  %v1550_v52 = vld [vmem:[%s4142_s5 + $0x78] sm:$0xff]  ;;  %v3173_v53 = vld [vmem:[%s4137_s0 + $0x60] ss:$8 sps:$4 sm:$0xff]  }
  0x2c   : > { %v3174_v54 = vld [vmem:[%s4137_s0 + $0x74] ss:$8 sps:$4 sm:$0xff]   ;;  %v1548_v61 = vld [vmem:[%s4142_s5 + $0x68] sm:$0xff]  ;;  %v3176_v62 = vld [vmem:[%s4137_s0 + $0x70] ss:$8 sps:$4 sm:$0xff]  }
  0x2d   : > { %2587 = vmatpush3.bf16.msra.mxu0 %v566_v8  ;;  %1125 = vperm.xlu0 %3151, %v401_v14   ;;  %v1266_v59 = vld [vmem:[%s4143_s6 + $0x58] sm:$0xff]  ;;  %v1265_v60 = vld [vmem:[%s4143_s6 + $0x50] sm:$0xff]  ;;  %v3177_v0 = vld [vmem:[%s4137_s0 + $0x84] ss:$8 sps:$4 sm:$0xff]  }
  0x2e   : > { %935 = vmatmul.mubr.bf16.vlgmr.msra.gmra.mxu1 %v3153_v12  ;;  %2588 = vmatprep.subr.bf16.mxu0 %v573_v13  ;;  %v1561_v63 = vld [vmem:[%s4142_s5 + $0xd0] sm:$0xff]  ;;  %v1264_v1 = vld [vmem:[%s4143_s6 + $0x48] sm:$0xff]  ;;  %v1562_v2 = vld [vmem:[%s4142_s5 + $0xd8] sm:$0xff] }
  0x2f   : > { %942 = vmatprep.mubr.bf16.mxu1 %v3156_v15  ;;  %1130 = vperm.xlu1 %3152, %v402_v17   ;;  %v1545_v3 = vld [vmem:[%s4142_s5 + $0x50] sm:$0xff]  ;;  %v1546_v4 = vld [vmem:[%s4142_s5 + $0x58] sm:$0xff]  ;;  %v3179_v5 = vld [vmem:[%s4137_s0 + $0x80] ss:$8 sps:$4 sm:$0xff]  }
  0x30   : > { %v1559_v6 = vld [vmem:[%s4142_s5 + $0xc0] sm:$0xff]  ;;  %v3180_v7 = vld [vmem:[%s4137_s0 + $0x94] ss:$8 sps:$4 sm:$0xff]   ;;  %v1560_v8 = vld [vmem:[%s4142_s5 + $0xc8] sm:$0xff] }
  0x31   : > { %2589 = vmatpush3.bf16.msra.mxu0 %v565_v16  ;;  %1135 = vperm.xlu0 %3151, %v403_v18   ;;  %v1543_v9 = vld [vmem:[%s4142_s5 + $0x40] sm:$0xff]  ;;  %v1262_v11 = vld [vmem:[%s4143_s6 + $0x38] sm:$0xff]  ;;  %v1557_v14 = vld [vmem:[%s4142_s5 + $0xb0] sm:$0xff] }
  0x32   : > { %3006 = vmatprep.subr.mxu0 %v1270_v47  ;;  %v1263_v10 = vld [vmem:[%s4143_s6 + $0x40] sm:$0xff]  ;;  %v3182_v13 = vld [vmem:[%s4137_s0 + $0x90] ss:$8 sps:$4 sm:$0xff]   ;;  %v1260_v17 = vld [vmem:[%s4143_s6 + $0x28] sm:$0xff] }
  0x33   : > { %1140 = vperm.xlu1 %3152, %v404_v19   ;;  %v3183_v16 = vld [vmem:[%s4137_s0 + $0xa4] ss:$8 sps:$4 sm:$0xff]   ;;  %v1558_v18 = vld [vmem:[%s4142_s5 + $0xb8] sm:$0xff]  ;;  %v1541_v19 = vld [vmem:[%s4142_s5 + $0x30] sm:$0xff] }
  0x34   : > { %774 = vmatmul.mubr.bf16.vlgmr.msra.gmra.mxu0 %v3153_v12  ;;  %v1544_v12 = vld [vmem:[%s4142_s5 + $0x48] sm:$0xff] }
  0x35   : > { %781 = vmatprep.mubr.bf16.mxu0 %v3156_v15  ;;  %1145 = vperm.xlu0 %3151, %v405_v21   ;;  %v1261_v15 = vld [vmem:[%s4143_s6 + $0x30] sm:$0xff]  ;;  %v1258_v21 = vld [vmem:[%s4143_s6 + $0x18] sm:$0xff] }
  0x36   : > { %943 = vmatmul.mubr.bf16.gmra.mxu1 %v3158_v20  ;;  %3007 = vmatpush3.msra.mxu0 %v1270_v47  ;;  %v1760_v47 = vld [vmem:[%s3783_s24 + $0x8] sm:$0xff] }
  0x37   : > { %950 = vmatprep.mubr.bf16.mxu1 %v3159_v22  ;;  %1150 = vperm.xlu1 %3152, %v406_v23   ;;  %v3185_v23 = vld [vmem:[%s4137_s0 + $0xa0] ss:$8 sps:$4 sm:$0xff]  }
  0x38   : > { %3008 = vmatprep.subr.mxu0 %v1269_v50 }
  0x39   : > { %1155 = vperm.xlu0 %3151, %v407_v25   ;;  %3009 = vmatpush3.msra.mxu0 %v1269_v50  ;;  %v1555_v25 = vld [vmem:[%s4142_s5 + $0xa0] sm:$0xff] }
  0x3a   : > { %3010 = vmatprep.subr.mxu0 %v1268_v51  ;;  %v3197_v50 = vld [vmem:[%s4137_s0 + $0xe0] ss:$8 sps:$4 sm:$0xff]  }
  0x3b   : > { %1160 = vperm.xlu1 %3152, %v408_v26   ;;  %3011 = vmatpush3.msra.mxu0 %v1268_v51  ;;  %v3186_v26 = vld [vmem:[%s4137_s0 + $0xb4] ss:$8 sps:$4 sm:$0xff]   ;;  %v1763_v51 = vld [vmem:[%s3783_s24 + $0x20] sm:$0xff] }
  0x3c   : > { %782 = vmatmul.mubr.bf16.gmra.mxu0 %v3158_v20  ;;  %3012 = vmatprep.subr.mxu0 %v1267_v56  ;;  %v1259_v20 = vld [vmem:[%s4143_s6 + $0x20] sm:$0xff] }
  0x3d   : > { %789 = vmatprep.mubr.bf16.mxu0 %v3159_v22  ;;  %1165 = vperm.xlu0 %3151, %v409_v27   ;;  %v1542_v22 = vld [vmem:[%s4142_s5 + $0x38] sm:$0xff]  ;;  %v1556_v27 = vld [vmem:[%s4142_s5 + $0xa8] sm:$0xff] }
  0x3e   : > { %951 = vmatmul.mubr.bf16.gmra.mxu1 %v3161_v24  ;;  %3013 = vmatpush3.msra.mxu0 %v1267_v56  ;;  %v3200_v56 = vld [vmem:[%s4137_s0 + $0xf0] ss:$8 sps:$4 sm:$0xff]  }
  0x3f   : > { %958 = vmatprep.mubr.bf16.mxu1 %v3162_v28  ;;  %1170 = vperm.xlu1 %3152, %v410_v29   ;;  %v1256_v29 = vld [vmem:[%s4143_s6 + $0x8] sm:$0xff] }
  0x40   : > { %3014 = vmatprep.subr.mxu0 %v1266_v59 }
  0x41   : > { %1175 = vperm.xlu0 %3151, %v411_v30   ;;  %3015 = vmatpush3.msra.mxu0 %v1266_v59  ;;  %v1255_v30 = vld [vmem:[%s4143_s6] sm:$0xff]  ;;  %v1769_v59 = vld [vmem:[%s3783_s24 + $0x50] sm:$0xff] }
  0x42   : > { %3016 = vmatprep.subr.mxu0 %v1265_v60 }
  0x43   : > { %1180 = vperm.xlu1 %3152, %v412_v31   ;;  %3017 = vmatpush3.msra.mxu0 %v1265_v60  ;;  %v1540_v31 = vld [vmem:[%s4142_s5 + $0x28] sm:$0xff]  ;;  %v1770_v60 = vld [vmem:[%s3783_s24 + $0x58] sm:$0xff] }
  0x44   : > { %790 = vmatmul.mubr.bf16.gmra.mxu0 %v3161_v24  ;;  %3018 = vmatprep.subr.mxu0 %v1264_v1  ;;  %v1257_v24 = vld [vmem:[%s4143_s6 + $0x10] sm:$0xff] }
  0x45   : > { %797 = vmatprep.mubr.bf16.mxu0 %v3162_v28  ;;  %1185 = vperm.xlu0 %3151, %v413_v33   ;;  %v1539_v28 = vld [vmem:[%s4142_s5 + $0x20] sm:$0xff]  ;;  %v1553_v33 = vld [vmem:[%s4142_s5 + $0x90] sm:$0xff] }
  0x46   : > { %959 = vmatmul.mubr.bf16.gmra.mxu1 %v3164_v32  ;;  %3019 = vmatpush3.msra.mxu0 %v1264_v1 }
  0x47   : > { %966 = vmatprep.mubr.bf16.mxu1 %v3165_v34  ;;  %1190 = vperm.xlu1 %3152, %v414_v36   ;;  %v1554_v36 = vld [vmem:[%s4142_s5 + $0x98] sm:$0xff] }
  0x48   : > { %3020 = vmatprep.subr.mxu0 %v1263_v10 }
  0x49   : > { %1195 = vperm.xlu0 %3151, %v415_v37   ;;  %3021 = vmatpush3.msra.mxu0 %v1263_v10  ;;  %v1537_v37 = vld [vmem:[%s4142_s5 + $0x10] sm:$0xff] }
  0x4a   : > { %3022 = vmatprep.subr.mxu0 %v1262_v11 }
  0x4b   : > { %1200 = vperm.xlu1 %3152, %v416_v38   ;;  %3023 = vmatpush3.msra.mxu0 %v1262_v11  ;;  %v1538_v38 = vld [vmem:[%s4142_s5 + $0x18] sm:$0xff] }
  0x4c   : > { %798 = vmatmul.mubr.bf16.gmra.mxu0 %v3164_v32  ;;  %3024 = vmatprep.subr.mxu0 %v1261_v15  ;;  %v3188_v32 = vld [vmem:[%s4137_s0 + $0xb0] ss:$8 sps:$4 sm:$0xff]  }
  0x4d   : > { %805 = vmatprep.mubr.bf16.mxu0 %v3165_v34  ;;  %1205 = vperm.xlu0 %3151, %v417_v40   ;;  %v3189_v34 = vld [vmem:[%s4137_s0 + $0xc4] ss:$8 sps:$4 sm:$0xff]  }
  0x4e   : > { %967 = vmatmul.mubr.bf16.gmra.mxu1 %v3167_v39  ;;  %3025 = vmatpush3.msra.mxu0 %v1261_v15  ;;  %v1551_v40 = vld [vmem:[%s4142_s5 + $0x80] sm:$0xff] }
  0x4f   : > { %974 = vmatprep.mubr.bf16.mxu1 %v3168_v44  ;;  %1210 = vperm.xlu1 %3152, %v418_v35   ;;  %v1552_v35 = vld [vmem:[%s4142_s5 + $0x88] sm:$0xff] }
  0x50   : > { %3026 = vmatprep.subr.mxu0 %v1260_v17 }
  0x51   : > { %1215 = vperm.xlu0 %3151, %v419_v41   ;;  %3027 = vmatpush3.msra.mxu0 %v1260_v17  ;;  %v1535_v41 = vld [vmem:[%s4142_s5] sm:$0xff] }
  0x52   : > { %3028 = vmatprep.subr.mxu0 %v1259_v20 }
  0x53   : > { %1220 = vperm.xlu1 %3152, %v420_v42   ;;  %3029 = vmatpush3.msra.mxu0 %v1259_v20  ;;  %v1536_v42 = vld [vmem:[%s4142_s5 + $0x8] sm:$0xff] }
  0x54   : > { %806 = vmatmul.mubr.bf16.gmra.mxu0 %v3167_v39  ;;  %3030 = vmatprep.subr.mxu0 %v1258_v21  ;;  %v3191_v39 = vld [vmem:[%s4137_s0 + $0xc0] ss:$8 sps:$4 sm:$0xff]  }
  0x55   : > { %813 = vmatprep.mubr.bf16.mxu0 %v3168_v44  ;;  %1719 = vperm.xlu0 %3151, %v1565_v45   ;;  %v3192_v44 = vld [vmem:[%s4137_s0 + $0xd4] ss:$8 sps:$4 sm:$0xff]   ;;  %v1759_v45 = vld [vmem:[%s3783_s24] sm:$0xff] }
  0x56   : > { %975 = vmatmul.mubr.bf16.gmra.mxu1 %v3170_v43  ;;  %3031 = vmatpush3.msra.mxu0 %v1258_v21 }
  0x57   : > { %982 = vmatprep.mubr.bf16.mxu1 %v3171_v46  ;;  %1724 = vperm.xlu1 %3152, %v1566_v48   ;;  %v1761_v48 = vld [vmem:[%s3783_s24 + $0x10] sm:$0xff] }
  0x58   : > { %3032 = vmatprep.subr.mxu0 %v1257_v24 }
  0x59   : > { %1639 = vperm.xlu0 %3151, %v1549_v49   ;;  %3033 = vmatpush3.msra.mxu0 %v1257_v24  ;;  %v1762_v49 = vld [vmem:[%s3783_s24 + $0x18] sm:$0xff] }
  0x5a   : > { %3034 = vmatprep.subr.mxu0 %v1256_v29 }
  0x5b   : > { %1644 = vperm.xlu1 %3152, %v1550_v52   ;;  %3035 = vmatpush3.msra.mxu0 %v1256_v29  ;;  %v3198_v52 = vld [vmem:[%s4137_s0 + $0xf4] ss:$8 sps:$4 sm:$0xff]  }
  0x5c   : > { %814 = vmatmul.mubr.bf16.gmra.mxu0 %v3170_v43  ;;  %3036 = vmatprep.subr.mxu0 %v1255_v30  ;;  %v3194_v43 = vld [vmem:[%s4137_s0 + $0xd0] ss:$8 sps:$4 sm:$0xff]  }
  0x5d   : > { %821 = vmatprep.mubr.bf16.mxu0 %v3171_v46  ;;  %1709 = vperm.xlu0 %3151, %v1563_v55   ;;  %v3195_v46 = vld [vmem:[%s4137_s0 + $0xe4] ss:$8 sps:$4 sm:$0xff]   ;;  %v1765_v55 = vld [vmem:[%s3783_s24 + $0x30] sm:$0xff] }
  0x5e   : > { %983 = vmatmul.mubr.bf16.gmra.mxu1 %v3173_v53  ;;  %3037 = vmatpush3.msra.mxu0 %v1255_v30 }
  0x5f   : > { %990 = vmatprep.mubr.bf16.mxu1 %v3174_v54  ;;  %1714 = vperm.xlu1 %3152, %v1564_v57   ;;  %v1767_v57 = vld [vmem:[%s3783_s24 + $0x40] sm:$0xff] }
  0x61   : > { %1629 = vperm.xlu0 %3151, %v1547_v58   ;;  %v1768_v58 = vld [vmem:[%s3783_s24 + $0x48] sm:$0xff] }
  0x63   : > { %1634 = vperm.xlu1 %3152, %v1548_v61   ;;  %v1771_v61 = vld [vmem:[%s3783_s24 + $0x60] sm:$0xff] }
  0x64   : > { %822 = vmatmul.mubr.bf16.gmra.mxu0 %v3173_v53  ;;  %v1764_v53 = vld [vmem:[%s3783_s24 + $0x28] sm:$0xff] }
  0x65   : > { %829 = vmatprep.mubr.bf16.mxu0 %v3174_v54  ;;  %1699 = vperm.xlu0 %3151, %v1561_v63   ;;  %v1766_v54 = vld [vmem:[%s3783_s24 + $0x38] sm:$0xff]  ;;  %v1773_v63 = vld [vmem:[%s3783_s24 + $0x70] sm:$0xff] }
  0x66   : > { %991 = vmatmul.mubr.bf16.gmra.mxu1 %v3176_v62 }
  0x67   : > { %998 = vmatprep.mubr.bf16.mxu1 %v3177_v0  ;;  %1704 = vperm.xlu1 %3152, %v1562_v2  }
  0x69   : > { %1619 = vperm.xlu0 %3151, %v1545_v3  }
  0x6b   : > { %1624 = vperm.xlu1 %3152, %v1546_v4  }
  0x6c   : > { %830 = vmatmul.mubr.bf16.gmra.mxu0 %v3176_v62  ;;  %v1772_v62 = vld [vmem:[%s3783_s24 + $0x68] sm:$0xff] }
  0x6d   : > { %837 = vmatprep.mubr.bf16.mxu0 %v3177_v0  ;;  %1689 = vperm.xlu0 %3151, %v1559_v6   ;;  %v1774_v0 = vld [vmem:[%s3783_s24 + $0x78] sm:$0xff] }
  0x6e   : > { %999 = vmatmul.mubr.bf16.gmra.mxu1 %v3179_v5 }
  0x6f   : > { %1006 = vmatprep.mubr.bf16.mxu1 %v3180_v7  ;;  %1694 = vperm.xlu1 %3152, %v1560_v8  }
  0x71   : > { %1609 = vperm.xlu0 %3151, %v1543_v9  }
  0x73   : > { %1614 = vperm.xlu1 %3152, %v1544_v12  }
  0x74   : > { %838 = vmatmul.mubr.bf16.gmra.mxu0 %v3179_v5 }
  0x75   : > { %845 = vmatprep.mubr.bf16.mxu0 %v3180_v7  ;;  %1679 = vperm.xlu0 %3151, %v1557_v14  }
  0x76   : > { %1007 = vmatmul.mubr.bf16.gmra.mxu1 %v3182_v13 }
  0x77   : > { %1014 = vmatprep.mubr.bf16.mxu1 %v3183_v16  ;;  %1684 = vperm.xlu1 %3152, %v1558_v18  }
  0x79   : > { %1599 = vperm.xlu0 %3151, %v1541_v19  }
  0x7b   : > { %1604 = vperm.xlu1 %3152, %v1542_v22  }
  0x7c   : > { %846 = vmatmul.mubr.bf16.gmra.mxu0 %v3182_v13 }
  0x7d   : > { %853 = vmatprep.mubr.bf16.mxu0 %v3183_v16  ;;  %1669 = vperm.xlu0 %3151, %v1555_v25  }
  0x7e   : > { %1015 = vmatmul.mubr.bf16.gmra.mxu1 %v3185_v23 }
  0x7f   : > { %1022 = vmatprep.mubr.bf16.mxu1 %v3186_v26  ;;  %1674 = vperm.xlu1 %3152, %v1556_v27  }
  0x81   : > { %1589 = vperm.xlu0 %3151, %v1539_v28  }
  0x83   : > { %1594 = vperm.xlu1 %3152, %v1540_v31  }
  0x84   : > { %854 = vmatmul.mubr.bf16.gmra.mxu0 %v3185_v23 }
  0x85   : > { %861 = vmatprep.mubr.bf16.mxu0 %v3186_v26  ;;  %1659 = vperm.xlu0 %3151, %v1553_v33  }
  0x86   : > { %1023 = vmatmul.mubr.bf16.gmra.mxu1 %v3188_v32 }
  0x87   : > { %1030 = vmatprep.mubr.bf16.mxu1 %v3189_v34  ;;  %1664 = vperm.xlu1 %3152, %v1554_v36  }
  0x89   : > { %1579 = vperm.xlu0 %3151, %v1537_v37  }
  0x8b   : > { %1584 = vperm.xlu1 %3152, %v1538_v38  }
  0x8c   : > { %862 = vmatmul.mubr.bf16.gmra.mxu0 %v3188_v32  ;;  %v1066_v8 = vpop.permute.xlu0 %1065 }
  0x8d   : > { %869 = vmatprep.mubr.bf16.mxu0 %v3189_v34  ;;  %1649 = vperm.xlu0 %3151, %v1551_v40  }
  0x8e   : > { %1031 = vmatmul.mubr.bf16.gmra.mxu1 %v3191_v39 }
  0x8f   : > { %1038 = vmatprep.mubr.bf16.mxu1 %v3192_v44  ;;  %1654 = vperm.xlu1 %3152, %v1552_v35  }
  0x90   : > { %v1076_v26 = vpop.permute.xlu1 %1075 }
  0x91   : > { %1569 = vperm.xlu0 %3151, %v1535_v41   ;;  %v1071_v21 = vpop.permute.xlu0 %1070 }
  0x93   : > { %1574 = vperm.xlu1 %3152, %v1536_v42  }
  0x94   : > { %870 = vmatmul.mubr.bf16.gmra.mxu0 %v3191_v39 }
  0x95   : > { %877 = vmatprep.mubr.bf16.mxu0 %v3192_v44  ;;  %2163 = vperm.xlu0 %3151, %v1759_v45   ;;  %v1081_v40 = vpop.permute.xlu1 %1080 }
  0x96   : > { %1039 = vmatmul.mubr.bf16.gmra.mxu1 %v3194_v43 }
  0x97   : > { %1046 = vmatprep.mubr.bf16.mxu1 %v3195_v46  ;;  %2168 = vperm.xlu1 %3152, %v1760_v47  }
  0x99   : > { %2173 = vperm.xlu0 %3151, %v1761_v48   ;;  %v1086_v48 = vpop.permute.xlu0 %1085 }
  0x9b   : > { %2178 = vperm.xlu1 %3152, %v1762_v49  }
  0x9c   : > { %878 = vmatmul.mubr.bf16.gmra.mxu0 %v3194_v43 }
  0x9d   : > { %885 = vmatprep.mubr.bf16.mxu0 %v3195_v46  ;;  %2183 = vperm.xlu0 %3151, %v1763_v51  }
  0x9e   : > { %1047 = vmatmul.mubr.bf16.gmra.mxu1 %v3197_v50 }
  0x9f   : > { %1054 = vmatprep.mubr.bf16.mxu1 %v3198_v52  ;;  %2188 = vperm.xlu1 %3152, %v1764_v53  }
  0xa1   : > { %2193 = vperm.xlu0 %3151, %v1765_v55  }
  0xa3   : > { %2198 = vperm.xlu1 %3152, %v1766_v54  }
  0xa4   : > { %886 = vmatmul.mubr.bf16.gmra.mxu0 %v3197_v50 }
  0xa5   : > { %893 = vmatprep.mubr.bf16.mxu0 %v3198_v52  ;;  %2203 = vperm.xlu0 %3151, %v1767_v57   ;;  %v1091_v57 = vpop.permute.xlu1 %1090 }
  0xa6   : > { %1055 = vmatmul.mubr.bf16.gmra.mxu1 %v3200_v56 }
  0xa7   : > { %2208 = vperm.xlu1 %3152, %v1768_v58  }
  0xa9   : > { %2213 = vperm.xlu0 %3151, %v1769_v59  }
  0xab   : > { %2218 = vperm.xlu1 %3152, %v1770_v60  }
  0xac   : > { %894 = vmatmul.mubr.bf16.gmra.mxu0 %v3200_v56 }
  0xad   : > { %2223 = vperm.xlu0 %3151, %v1771_v61  }
  0xaf   : > { %2228 = vperm.xlu1 %3152, %v1772_v62  }
  0xb1   : > { %2233 = vperm.xlu0 %3151, %v1773_v63  }
  0xb3   : > { %2238 = vperm.xlu1 %3152, %v1774_v0  }
  0xee   : > { %v2702_v1 = vpop.f32.mrf.mxu1 }
  0xf0   : > { %v2703_v2 = vpop.f32.mrf.mxu1 }
  0xf1   : > { %v2704_v9 = vadd.f32 %v2703_v2, %v2702_v1  ;;  %v1096_v2 = vpop.permute.xlu0 %1095 }
  0xf2   : > { %v2705_v3 = vpop.f32.mrf.mxu1 }
  0xf4   : > { %v2590_v4 = vpop.f32.mrf.mxu0  ;;  %v2706_v5 = vpop.f32.mrf.mxu1 }
  0xf5   : > { %v2707_v16 = vadd.f32 %v2706_v5, %v2705_v3 }
  0xf6   : > { %v2591_v6 = vpop.f32.mrf.mxu0  ;;  %v2708_v7 = vpop.f32.mrf.mxu1 }
  0xf7   : > { %v2592_v10 = vadd.f32 %v2591_v6, %v2590_v4 }
  0xf8   : > { %v2593_v11 = vpop.f32.mrf.mxu0  ;;  %v2709_v12 = vpop.f32.mrf.mxu1 }
  0xf9   : > { %v937_v13 = vadd.f32 %v2704_v9, %v2592_v10  ;;  %v2710_v24 = vadd.f32 %v2709_v12, %v2708_v7 }
  0xfa   : > { %v2594_v14 = vpop.f32.mrf.mxu0  ;;  %v2711_v15 = vpop.f32.mrf.mxu1 }
  0xfb   : > { %v2595_v17 = vadd.f32 %v2594_v14, %v2593_v11  ;;  %v1223_v18 = vmul.f32 %v1066_v8, %v937_v13  ;;  %v1101_v11 = vpop.permute.xlu1 %1100 }
  0xfc   : > { %v2596_v19 = vpop.f32.mrf.mxu0  ;;  %v2712_v20 = vpop.f32.mrf.mxu1 }
  0xfd   : > { %v940_v22 = vadd.f32 %v2707_v16, %v2595_v17  ;;  %3038 = vmatprep.mubr.f32.mxu0 %v1223_v18  ;;  %v2713_v34 = vadd.f32 %v2712_v20, %v2711_v15  ;;  %v1106_v20 = vpop.permute.xlu0 %1105 }
  0xfe   : > { %v2597_v23 = vpop.f32.mrf.mxu0  ;;  %v2714_v25 = vpop.f32.mrf.mxu1 }
  0xff   : > { %v1224_v27 = vmul.f32 %v1071_v21, %v940_v22  ;;  %v2598_v28 = vadd.f32 %v2597_v23, %v2596_v19 }
 0x100   : > { %v2599_v29 = vpop.f32.mrf.mxu0  ;;  %v2715_v30 = vpop.f32.mrf.mxu1 }
 0x101   : > { %v945_v31 = vadd.f32 %v2710_v24, %v2598_v28  ;;  %3039 = vmatmul.mubr.f32.vlgmr.msra.gmra.mxu0 %v1224_v27  ;;  %v2716_v42 = vadd.f32 %v2715_v30, %v2714_v25 }
 0x102   : > { %v2600_v32 = vpop.f32.mrf.mxu0  ;;  %v2717_v33 = vpop.f32.mrf.mxu1 }
 0x103   : > { %v2601_v36 = vadd.f32 %v2600_v32, %v2599_v29  ;;  %v1225_v37 = vmul.f32 %v1076_v26, %v945_v31  ;;  %v1111_v29 = vpop.permute.xlu1 %1110 }
 0x104   : > { %v2602_v38 = vpop.f32.mrf.mxu0  ;;  %v2718_v39 = vpop.f32.mrf.mxu1 }
 0x105   : > { %v948_v44 = vadd.f32 %v2713_v34, %v2601_v36  ;;  %3041 = vmatprep.mubr.f32.mxu0 %v1225_v37  ;;  %v2719_v52 = vadd.f32 %v2718_v39, %v2717_v33  ;;  %v1116_v39 = vpop.permute.xlu0 %1115 }
 0x106   : > { %v2603_v35 = vpop.f32.mrf.mxu0  ;;  %v2720_v41 = vpop.f32.mrf.mxu1 }
 0x107   : > { %v2604_v43 = vadd.f32 %v2603_v35, %v2602_v38  ;;  %v1226_v45 = vmul.f32 %v1081_v40, %v948_v44 }
 0x108   : > { %v2605_v46 = vpop.f32.mrf.mxu0  ;;  %v2721_v47 = vpop.f32.mrf.mxu1 }
 0x109   : > { %v953_v49 = vadd.f32 %v2716_v42, %v2604_v43  ;;  %3042 = vmatmul.mubr.f32.gmra.mxu0 %v1226_v45  ;;  %v2722_v61 = vadd.f32 %v2721_v47, %v2720_v41  ;;  %v1121_v47 = vpop.permute.xlu1 %1120 }
 0x10a   : > { %v2606_v50 = vpop.f32.mrf.mxu0  ;;  %v2723_v51 = vpop.f32.mrf.mxu1 }
 0x10b   : > { %v2607_v53 = vadd.f32 %v2606_v50, %v2605_v46  ;;  %v1227_v55 = vmul.f32 %v1086_v48, %v953_v49 }
 0x10c   : > { %v2608_v54 = vpop.f32.mrf.mxu0  ;;  %v2724_v56 = vpop.f32.mrf.mxu1 }
 0x10d   : > { %v956_v58 = vadd.f32 %v2719_v52, %v2607_v53  ;;  %3044 = vmatprep.mubr.f32.mxu0 %v1227_v55  ;;  %v2725_v6 = vadd.f32 %v2724_v56, %v2723_v51  ;;  %v1126_v56 = vpop.permute.xlu0 %1125 }
 0x10e   : > { %v2609_v59 = vpop.f32.mrf.mxu0  ;;  %v2726_v60 = vpop.f32.mrf.mxu1 }
 0x10f   : > { %v2610_v62 = vadd.f32 %v2609_v59, %v2608_v54  ;;  %v1228_v63 = vmul.f32 %v1091_v57, %v956_v58 }
 0x110   : > { %v2611_v0 = vpop.f32.mrf.mxu0  ;;  %v2727_v1 = vpop.f32.mrf.mxu1 }
 0x111   : > { %v961_v3 = vadd.f32 %v2722_v61, %v2610_v62  ;;  %3045 = vmatmul.mubr.f32.gmra.mxu0 %v1228_v63  ;;  %v2728_v15 = vadd.f32 %v2727_v1, %v2726_v60  ;;  %v1131_v1 = vpop.permute.xlu1 %1130 }
 0x112   : > { %v2612_v4 = vpop.f32.mrf.mxu0  ;;  %v2729_v5 = vpop.f32.mrf.mxu1 }
 0x113   : > { %v2613_v7 = vadd.f32 %v2612_v4, %v2611_v0  ;;  %v1229_v8 = vmul.f32 %v1096_v2, %v961_v3 }
 0x114   : > { %v2614_v9 = vpop.f32.mrf.mxu0  ;;  %v2730_v10 = vpop.f32.mrf.mxu1 }
 0x115   : > { %v964_v12 = vadd.f32 %v2725_v6, %v2613_v7  ;;  %3047 = vmatprep.mubr.f32.mxu0 %v1229_v8  ;;  %v2731_v25 = vadd.f32 %v2730_v10, %v2729_v5  ;;  %v1136_v10 = vpop.permute.xlu0 %1135 }
 0x116   : > { %v2615_v13 = vpop.f32.mrf.mxu0  ;;  %v2732_v14 = vpop.f32.mrf.mxu1 }
 0x117   : > { %v2616_v16 = vadd.f32 %v2615_v13, %v2614_v9  ;;  %v1230_v17 = vmul.f32 %v1101_v11, %v964_v12 }
 0x118   : > { %v2617_v18 = vpop.f32.mrf.mxu0  ;;  %v2733_v19 = vpop.f32.mrf.mxu1 }
 0x119   : > { %v969_v21 = vadd.f32 %v2728_v15, %v2616_v16  ;;  %3048 = vmatmul.mubr.f32.gmra.mxu0 %v1230_v17  ;;  %v2734_v33 = vadd.f32 %v2733_v19, %v2732_v14  ;;  %v1141_v19 = vpop.permute.xlu1 %1140 }
 0x11a   : > { %v2618_v22 = vpop.f32.mrf.mxu0  ;;  %v2735_v23 = vpop.f32.mrf.mxu1 }
 0x11b   : > { %v2619_v26 = vadd.f32 %v2618_v22, %v2617_v18  ;;  %v1231_v24 = vmul.f32 %v1106_v20, %v969_v21 }
 0x11c   : > { %v2620_v27 = vpop.f32.mrf.mxu0  ;;  %v2736_v28 = vpop.f32.mrf.mxu1 }
 0x11d   : > { %v972_v30 = vadd.f32 %v2731_v25, %v2619_v26  ;;  %3050 = vmatprep.mubr.f32.mxu0 %v1231_v24  ;;  %v2737_v41 = vadd.f32 %v2736_v28, %v2735_v23  ;;  %v1146_v28 = vpop.permute.xlu0 %1145 }
 0x11e   : > { %v2621_v31 = vpop.f32.mrf.mxu0  ;;  %v2738_v32 = vpop.f32.mrf.mxu1 }
 0x11f   : > { %v2622_v34 = vadd.f32 %v2621_v31, %v2620_v27  ;;  %v1232_v36 = vmul.f32 %v1111_v29, %v972_v30 }
 0x120   : > { %v2623_v37 = vpop.f32.mrf.mxu0  ;;  %v2739_v38 = vpop.f32.mrf.mxu1 }
 0x121   : > { %v977_v40 = vadd.f32 %v2734_v33, %v2622_v34  ;;  %3051 = vmatmul.mubr.f32.gmra.mxu0 %v1232_v36  ;;  %v2740_v51 = vadd.f32 %v2739_v38, %v2738_v32  ;;  %v1151_v38 = vpop.permute.xlu1 %1150 }
 0x122   : > { %v2624_v44 = vpop.f32.mrf.mxu0  ;;  %v2741_v35 = vpop.f32.mrf.mxu1 }
 0x123   : > { %v2625_v42 = vadd.f32 %v2624_v44, %v2623_v37  ;;  %v1233_v43 = vmul.f32 %v1116_v39, %v977_v40 }
 0x124   : > { %v2626_v45 = vpop.f32.mrf.mxu0  ;;  %v2742_v46 = vpop.f32.mrf.mxu1 }
 0x125   : > { %v980_v48 = vadd.f32 %v2737_v41, %v2625_v42  ;;  %3053 = vmatprep.mubr.f32.mxu0 %v1233_v43  ;;  %v2743_v60 = vadd.f32 %v2742_v46, %v2741_v35  ;;  %v1156_v46 = vpop.permute.xlu0 %1155 }
 0x126   : > { %v2627_v49 = vpop.f32.mrf.mxu0  ;;  %v2744_v50 = vpop.f32.mrf.mxu1 }
 0x127   : > { %v2628_v52 = vadd.f32 %v2627_v49, %v2626_v45  ;;  %v1234_v53 = vmul.f32 %v1121_v47, %v980_v48 }
 0x128   : > { %v2629_v55 = vpop.f32.mrf.mxu0  ;;  %v2745_v54 = vpop.f32.mrf.mxu1 }
 0x129   : > { %v985_v57 = vadd.f32 %v2740_v51, %v2628_v52  ;;  %3054 = vmatmul.mubr.f32.gmra.mxu0 %v1234_v53  ;;  %v2746_v5 = vadd.f32 %v2745_v54, %v2744_v50  ;;  %v1161_v50 = vpop.permute.xlu1 %1160 }
 0x12a   : > { %v2630_v58 = vpop.f32.mrf.mxu0  ;;  %v2747_v59 = vpop.f32.mrf.mxu1 }
 0x12b   : > { %v2631_v61 = vadd.f32 %v2630_v58, %v2629_v55  ;;  %v1235_v62 = vmul.f32 %v1126_v56, %v985_v57 }
 0x12c   : > { %v2632_v63 = vpop.f32.mrf.mxu0  ;;  %v2748_v0 = vpop.f32.mrf.mxu1 }
 0x12d   : > { %v988_v2 = vadd.f32 %v2743_v60, %v2631_v61  ;;  %3056 = vmatprep.mubr.f32.mxu0 %v1235_v62  ;;  %v2749_v14 = vadd.f32 %v2748_v0, %v2747_v59  ;;  %v1166_v59 = vpop.permute.xlu0 %1165 }
 0x12e   : > { %v2633_v3 = vpop.f32.mrf.mxu0  ;;  %v2750_v4 = vpop.f32.mrf.mxu1 }
 0x12f   : > { %v2634_v6 = vadd.f32 %v2633_v3, %v2632_v63  ;;  %v1236_v7 = vmul.f32 %v1131_v1, %v988_v2  ;;  %v1171_v1 = vpop.permute.xlu1 %1170 }
 0x130   : > { %v2635_v8 = vpop.f32.mrf.mxu0  ;;  %v2751_v9 = vpop.f32.mrf.mxu1 }
 0x131   : > { %v993_v11 = vadd.f32 %v2746_v5, %v2634_v6  ;;  %3057 = vmatmul.mubr.f32.gmra.mxu0 %v1236_v7  ;;  %v2752_v23 = vadd.f32 %v2751_v9, %v2750_v4 }
 0x132   : > { %v2636_v12 = vpop.f32.mrf.mxu0  ;;  %v2753_v13 = vpop.f32.mrf.mxu1 }
 0x133   : > { %v2637_v15 = vadd.f32 %v2636_v12, %v2635_v8  ;;  %v1237_v16 = vmul.f32 %v1136_v10, %v993_v11  ;;  %v1176_v10 = vpop.permute.xlu0 %1175 }
 0x134   : > { %v2638_v17 = vpop.f32.mrf.mxu0  ;;  %v2754_v18 = vpop.f32.mrf.mxu1 }
 0x135   : > { %v996_v20 = vadd.f32 %v2749_v14, %v2637_v15  ;;  %3059 = vmatprep.mubr.f32.mxu0 %v1237_v16  ;;  %v2755_v32 = vadd.f32 %v2754_v18, %v2753_v13  ;;  %v1181_v14 = vpop.permute.xlu1 %1180 }
 0x136   : > { %v2639_v21 = vpop.f32.mrf.mxu0  ;;  %v2756_v22 = vpop.f32.mrf.mxu1 }
 0x137   : > { %v2640_v25 = vadd.f32 %v2639_v21, %v2638_v17  ;;  %v1238_v26 = vmul.f32 %v1141_v19, %v996_v20 }
 0x138   : > { %v2641_v24 = vpop.f32.mrf.mxu0  ;;  %v2757_v27 = vpop.f32.mrf.mxu1 }
 0x139   : > { %v1001_v29 = vadd.f32 %v2752_v23, %v2640_v25  ;;  %3060 = vmatmul.mubr.f32.gmra.mxu0 %v1238_v26  ;;  %v2758_v35 = vadd.f32 %v2757_v27, %v2756_v22  ;;  %v1186_v23 = vpop.permute.xlu0 %1185 }
 0x13a   : > { %v2642_v30 = vpop.f32.mrf.mxu0  ;;  %v2759_v31 = vpop.f32.mrf.mxu1 }
 0x13b   : > { %v2643_v33 = vadd.f32 %v2642_v30, %v2641_v24  ;;  %v1239_v34 = vmul.f32 %v1146_v28, %v1001_v29  ;;  %v1191_v29 = vpop.permute.xlu1 %1190 }
 0x13c   : > { %v2644_v36 = vpop.f32.mrf.mxu0  ;;  %v2760_v37 = vpop.f32.mrf.mxu1 }
 0x13d   : > { %v1004_v39 = vadd.f32 %v2755_v32, %v2643_v33  ;;  %3062 = vmatprep.mubr.f32.mxu0 %v1239_v34  ;;  %v2761_v51 = vadd.f32 %v2760_v37, %v2759_v31 }
 0x13e   : > { %v2645_v40 = vpop.f32.mrf.mxu0  ;;  %v2762_v44 = vpop.f32.mrf.mxu1 }
 0x13f   : > { %v2646_v41 = vadd.f32 %v2645_v40, %v2644_v36  ;;  %v1240_v42 = vmul.f32 %v1151_v38, %v1004_v39  ;;  %v1196_v39 = vpop.permute.xlu0 %1195 }
 0x140   : > { %v2647_v43 = vpop.f32.mrf.mxu0  ;;  %v2763_v45 = vpop.f32.mrf.mxu1 }
 0x141   : > { %v1009_v47 = vadd.f32 %v2758_v35, %v2646_v41  ;;  %3063 = vmatmul.mubr.f32.gmra.mxu0 %v1240_v42  ;;  %v2764_v60 = vadd.f32 %v2763_v45, %v2762_v44  ;;  %v1201_v41 = vpop.permute.xlu1 %1200 }
 0x142   : > { %v2648_v48 = vpop.f32.mrf.mxu0  ;;  %v2765_v49 = vpop.f32.mrf.mxu1 }
 0x143   : > { %v2649_v52 = vadd.f32 %v2648_v48, %v2647_v43  ;;  %v1241_v53 = vmul.f32 %v1156_v46, %v1009_v47 }
 0x144   : > { %v2650_v55 = vpop.f32.mrf.mxu0  ;;  %v2766_v54 = vpop.f32.mrf.mxu1 }
 0x145   : > { %v1012_v56 = vadd.f32 %v2761_v51, %v2649_v52  ;;  %3065 = vmatprep.mubr.f32.mxu0 %v1241_v53  ;;  %v2767_v5 = vadd.f32 %v2766_v54, %v2765_v49  ;;  %v1206_v51 = vpop.permute.xlu0 %1205 }
 0x146   : > { %v2651_v57 = vpop.f32.mrf.mxu0  ;;  %v2768_v58 = vpop.f32.mrf.mxu1 }
 0x147   : > { %v2652_v61 = vadd.f32 %v2651_v57, %v2650_v55  ;;  %v1242_v62 = vmul.f32 %v1161_v50, %v1012_v56  ;;  %v1211_v57 = vpop.permute.xlu1 %1210 }
 0x148   : > { %v2653_v63 = vpop.f32.mrf.mxu0  ;;  %v2769_v0 = vpop.f32.mrf.mxu1 }
 0x149   : > { %v1017_v2 = vadd.f32 %v2764_v60, %v2652_v61  ;;  %3066 = vmatmul.mubr.f32.gmra.mxu0 %v1242_v62  ;;  %v2770_v15 = vadd.f32 %v2769_v0, %v2768_v58 }
 0x14a   : > { %v2654_v3 = vpop.f32.mrf.mxu0  ;;  %v2771_v4 = vpop.f32.mrf.mxu1 }
 0x14b   : > { %v2655_v6 = vadd.f32 %v2654_v3, %v2653_v63  ;;  %v1243_v7 = vmul.f32 %v1166_v59, %v1017_v2  ;;  %v1216_v2 = vpop.permute.xlu0 %1215 }
 0x14c   : > { %v2656_v8 = vpop.f32.mrf.mxu0  ;;  %v2772_v9 = vpop.f32.mrf.mxu1 }
 0x14d   : > { %v1020_v11 = vadd.f32 %v2767_v5, %v2655_v6  ;;  %3068 = vmatprep.mubr.f32.mxu0 %v1243_v7  ;;  %v2773_v25 = vadd.f32 %v2772_v9, %v2771_v4  ;;  %v1221_v6 = vpop.permute.xlu1 %1220 }
 0x14e   : > { %v2657_v12 = vpop.f32.mrf.mxu0  ;;  %v2774_v13 = vpop.f32.mrf.mxu1 }
 0x14f   : > { %v2658_v16 = vadd.f32 %v2657_v12, %v2656_v8  ;;  %v1244_v17 = vmul.f32 %v1171_v1, %v1020_v11 }
 0x150   : > { %v2659_v18 = vpop.f32.mrf.mxu0  ;;  %v2775_v19 = vpop.f32.mrf.mxu1 }
 0x151   : > { %v1025_v20 = vadd.f32 %v2770_v15, %v2658_v16  ;;  %3069 = vmatmul.mubr.f32.gmra.mxu0 %v1244_v17  ;;  %v2776_v33 = vadd.f32 %v2775_v19, %v2774_v13 }
 0x152   : > { %v2660_v21 = vpop.f32.mrf.mxu0  ;;  %v2777_v22 = vpop.f32.mrf.mxu1 }
 0x153   : > { %v2661_v26 = vadd.f32 %v2660_v21, %v2659_v18  ;;  %v1245_v24 = vmul.f32 %v1176_v10, %v1025_v20  ;;  %v3821_v20 = vpop.permute.xlu1 %1724 }
 0x154   : > { %v2662_v27 = vpop.f32.mrf.mxu0  ;;  %v2778_v28 = vpop.f32.mrf.mxu1 }
 0x155   : > { %v1028_v30 = vadd.f32 %v2773_v25, %v2661_v26  ;;  %3071 = vmatprep.mubr.f32.mxu0 %v1245_v24  ;;  %v2779_v42 = vadd.f32 %v2778_v28, %v2777_v22 }
 0x156   : > { %v2663_v31 = vpop.f32.mrf.mxu0  ;;  %v2780_v32 = vpop.f32.mrf.mxu1 }
 0x157   : > { %v2664_v34 = vadd.f32 %v2663_v31, %v2662_v27  ;;  %v1246_v36 = vmul.f32 %v1181_v14, %v1028_v30  ;;  %v3819_v14 = vpop.permute.xlu0 %1719  ;;  %v3825_v31 = vpop.permute.xlu1 %1644 }
 0x158   : > { %v2665_v37 = vpop.f32.mrf.mxu0  ;;  %v2781_v38 = vpop.f32.mrf.mxu1 }
 0x159   : > { %v1033_v40 = vadd.f32 %v2776_v33, %v2664_v34  ;;  %3072 = vmatmul.mubr.f32.gmra.mxu0 %v1246_v36  ;;  %v2782_v52 = vadd.f32 %v2781_v38, %v2780_v32 }
 0x15a   : > { %v2666_v44 = vpop.f32.mrf.mxu0  ;;  %v2783_v35 = vpop.f32.mrf.mxu1 }
 0x15b   : > { %v2667_v43 = vadd.f32 %v2666_v44, %v2665_v37  ;;  %v1247_v45 = vmul.f32 %v1186_v23, %v1033_v40 }
 0x15c   : > { %v2668_v46 = vpop.f32.mrf.mxu0  ;;  %v2784_v47 = vpop.f32.mrf.mxu1 }
 0x15d   : > { %v1036_v48 = vadd.f32 %v2779_v42, %v2667_v43  ;;  %3074 = vmatprep.mubr.f32.mxu0 %v1247_v45  ;;  %v2785_v61 = vadd.f32 %v2784_v47, %v2783_v35 }
 0x15e   : > { %v2669_v49 = vpop.f32.mrf.mxu0  ;;  %v2786_v50 = vpop.f32.mrf.mxu1 }
 0x15f   : > { %v2670_v53 = vadd.f32 %v2669_v49, %v2668_v46  ;;  %v1248_v55 = vmul.f32 %v1191_v29, %v1036_v48  ;;  %v3823_v29 = vpop.permute.xlu0 %1639 }
 0x160   : > { %v2671_v54 = vpop.f32.mrf.mxu0  ;;  %v2787_v56 = vpop.f32.mrf.mxu1 }
 0x161   : > { %v1041_v58 = vadd.f32 %v2782_v52, %v2670_v53  ;;  %3075 = vmatmul.mubr.f32.gmra.mxu0 %v1248_v55  ;;  %v2788_v7 = vadd.f32 %v2787_v56, %v2786_v50 }
 0x162   : > { %v2672_v59 = vpop.f32.mrf.mxu0  ;;  %v2789_v60 = vpop.f32.mrf.mxu1 }
 0x163   : > { %v2673_v62 = vadd.f32 %v2672_v59, %v2671_v54  ;;  %v1249_v63 = vmul.f32 %v1196_v39, %v1041_v58  ;;  %v3827_v38 = vpop.permute.xlu0 %1709  ;;  %v3829_v39 = vpop.permute.xlu1 %1714 }
 0x164   : > { %v2674_v0 = vpop.f32.mrf.mxu0  ;;  %v2790_v1 = vpop.f32.mrf.mxu1 }
 0x165   : > { %v1044_v3 = vadd.f32 %v2785_v61, %v2673_v62  ;;  %3077 = vmatprep.mubr.f32.mxu0 %v1249_v63  ;;  %v2791_v15 = vadd.f32 %v2790_v1, %v2789_v60  ;;  %v3868_v61 = vld [vmem:[%s4144_s7] ss:$0 sm:$0xff] }
 0x166   : > { %v2675_v4 = vpop.f32.mrf.mxu0  ;;  %v2792_v5 = vpop.f32.mrf.mxu1 }
 0x167   : > { %v2676_v8 = vadd.f32 %v2675_v4, %v2674_v0  ;;  %v1250_v9 = vmul.f32 %v1201_v41, %v1044_v3  ;;  %v3831_v40 = vpop.permute.xlu0 %1629  ;;  %v3833_v44 = vpop.permute.xlu1 %1634 }
 0x168   : > { %v2677_v10 = vpop.f32.mrf.mxu0  ;;  %v2793_v11 = vpop.f32.mrf.mxu1 }
 0x169   : > { %v1049_v12 = vadd.f32 %v2788_v7, %v2676_v8  ;;  %3078 = vmatmul.mubr.f32.gmra.mxu0 %v1250_v9  ;;  %v2794_v23 = vadd.f32 %v2793_v11, %v2792_v5 }
 0x16a   : > { %v2678_v13 = vpop.f32.mrf.mxu0  ;;  %v2795_v18 = vpop.f32.mrf.mxu1 }
 0x16b   : > { %v2679_v16 = vadd.f32 %v2678_v13, %v2677_v10  ;;  %v1251_v17 = vmul.f32 %v1206_v51, %v1049_v12  ;;  %v3835_v35 = vpop.permute.xlu0 %1699  ;;  %v3837_v41 = vpop.permute.xlu1 %1704 }
 0x16c   : > { %v2680_v19 = vpop.f32.mrf.mxu0  ;;  %v2796_v24 = vpop.f32.mrf.mxu1 }
 0x16d   : > { %v1052_v21 = vadd.f32 %v2791_v15, %v2679_v16  ;;  %3080 = vmatprep.mubr.f32.mxu0 %v1251_v17  ;;  %v2797_v32 = vadd.f32 %v2796_v24, %v2795_v18 }
 0x16e   : > { %v2681_v22 = vpop.f32.mrf.mxu0 }
 0x16f   : > { %v2682_v25 = vadd.f32 %v2681_v22, %v2680_v19  ;;  %v1252_v26 = vmul.f32 %v1211_v57, %v1052_v21  ;;  %v3839_v42 = vpop.permute.xlu0 %1619  ;;  %v3841_v43 = vpop.permute.xlu1 %1624 }
 0x170   : > { %v2683_v27 = vpop.f32.mrf.mxu0 }
 0x171   : > { %v1057_v28 = vadd.f32 %v2794_v23, %v2682_v25  ;;  %3081 = vmatmul.mubr.f32.gmra.mxu0 %v1252_v26 }
 0x172   : > { %v2684_v30 = vpop.f32.mrf.mxu0 }
 0x173   : > { %v2685_v33 = vadd.f32 %v2684_v30, %v2683_v27  ;;  %v1253_v34 = vmul.f32 %v1216_v2, %v1057_v28  ;;  %v3843_v45 = vpop.permute.xlu0 %1689  ;;  %v3845_v46 = vpop.permute.xlu1 %1694 }
 0x175   : > { %v1060_v36 = vadd.f32 %v2797_v32, %v2685_v33  ;;  %3083 = vmatprep.mubr.f32.mxu0 %v1253_v34 }
 0x177   : > { %v1254_v37 = vmul.f32 %v1221_v6, %v1060_v36  ;;  %v3847_v47 = vpop.permute.xlu0 %1609  ;;  %v3849_v48 = vpop.permute.xlu1 %1614 }
 0x179   : > { %3084 = vmatmul.mubr.f32.gmra.mxu0 %v1254_v37 }
 0x17b   : > { %v3851_v49 = vpop.permute.xlu0 %1679  ;;  %v3853_v50 = vpop.permute.xlu1 %1684 }
 0x17f   : > { %v3855_v51 = vpop.permute.xlu0 %1599  ;;  %v1605_v52 = vpop.permute.xlu1 %1604 }
 0x183   : > { %v3857_v53 = vpop.permute.xlu0 %1669  ;;  %v3859_v55 = vpop.permute.xlu1 %1674 }
 0x187   : > { %v1590_v54 = vpop.permute.xlu0 %1589  ;;  %v1595_v56 = vpop.permute.xlu1 %1594 }
 0x18b   : > { %v3861_v57 = vpop.permute.xlu0 %1659  ;;  %v3863_v58 = vpop.permute.xlu1 %1664 }
 0x18f   : > { %v1580_v59 = vpop.permute.xlu0 %1579  ;;  %v1585_v60 = vpop.permute.xlu1 %1584 }
 0x193   : > { %v3870_v62 = vpop.permute.xlu0 %1649  ;;  %v3872_v63 = vpop.permute.xlu1 %1654 }
 0x197   : > { %v1570_v6 = vpop.permute.xlu0 %1569  ;;  %v1575_v7 = vpop.permute.xlu1 %1574 }
 0x1c1   : > { %v3040_v0 = vpop.f32.mrf.mxu0 }
 0x1c2   : > { %v1350_v1 = vadd.f32 %v3040_v0, %v3868_v61 }
 0x1c3   : > { %v1344_v2 = vpop.f32.mrf.mxu0 }
 0x1c4   : > { %v1504_v3 = vmax.f32 %v1350_v1, 0.0  ;;  %v1345_v4 = vadd.f32 %v3868_v61, %v1344_v2 }
 0x1c6   : > { %v1503_v5 = vmax.f32 %v1345_v4, 0.0  ;;  %v1728_v8 = vmul.f32 %v1575_v7, %v1504_v3 }
 0x1c8   : > { %v1727_v9 = vmul.f32 %v1570_v6, %v1503_v5 }
 0x1c9   : > { %v3043_v10 = vpop.f32.mrf.mxu0 }
 0x1ca   : > { %v3876_v11 = vpack.c.bf16 %v1728_v8, %v1727_v9  ;;  %v1360_v12 = vadd.f32 %v3043_v10, %v3868_v61 }
 0x1cb   : > { %v1354_v13 = vpop.f32.mrf.mxu0 }
 0x1cc   : > { %4156 = vst [vmem:[#allocation2_spill] sm:$0xff] %v3876_v11  ;;  %v1807_v15 = vunpack.c.l.bf16 %v3876_v11  ;;  %v1808_v16 = vunpack.c.h.bf16 %v3876_v11  ;;  %v1506_v17 = vmax.f32 %v1360_v12, 0.0  ;;  %v1355_v18 = vadd.f32 %v3868_v61, %v1354_v13 }
 0x1ce   : > { %v3882_v19 = vsub.f32 %v1727_v9, %v1807_v15  ;;  %v3884_v21 = vsub.f32 %v1728_v8, %v1808_v16  ;;  %v1505_v22 = vmax.f32 %v1355_v18, 0.0  ;;  %v1730_v25 = vmul.f32 %v1585_v60, %v1506_v17  ;;  %v3203_v17 = vld [vmem:[%s3917_s14 + $0x4] ss:$8 sps:$4 sm:$0xff]  }
 0x1cf   : > { %1999 = vmatprep.mubr.bf16.mxu1 %v3203_v17  ;;  %2096 = vmatprep.mubr.bf16.mxu0 %v3203_v17 }
 0x1d0   : > { %4157 = vst [vmem:[#allocation3_spill] sm:$0xff] %v3882_v19  ;;  %4158 = vst [vmem:[#allocation4_spill] sm:$0xff] %v3884_v21  ;;  %v1729_v26 = vmul.f32 %v1580_v59, %v1505_v22 }
 0x1d1   : > { %v3046_v24 = vpop.f32.mrf.mxu0 }
 0x1d2   : > { %v3888_v27 = vpack.c.bf16 %v1730_v25, %v1729_v26  ;;  %v1370_v28 = vadd.f32 %v3046_v24, %v3868_v61 }
 0x1d3   : > { %v1364_v30 = vpop.f32.mrf.mxu0 }
 0x1d4   : > { %4159 = vst [vmem:[#allocation5_spill] sm:$0xff] %v3888_v27  ;;  %v1809_v32 = vunpack.c.l.bf16 %v3888_v27  ;;  %v1810_v33 = vunpack.c.h.bf16 %v3888_v27  ;;  %v1508_v34 = vmax.f32 %v1370_v28, 0.0  ;;  %v1365_v36 = vadd.f32 %v3868_v61, %v1364_v30 }
 0x1d6   : > { %v3894_v37 = vsub.f32 %v1729_v26, %v1809_v32  ;;  %v3896_v0 = vsub.f32 %v1730_v25, %v1810_v33  ;;  %v1507_v1 = vmax.f32 %v1365_v36, 0.0  ;;  %v1732_v60 = vmul.f32 %v1595_v56, %v1508_v34 }
 0x1d8   : > { %4160 = vst [vmem:[#allocation6_spill] sm:$0xff] %v3894_v37  ;;  %4161 = vst [vmem:[#allocation7_spill] sm:$0xff] %v3896_v0  ;;  %v1731_v2 = vmul.f32 %v1590_v54, %v1507_v1 }
 0x1d9   : > { %v3049_v3 = vpop.f32.mrf.mxu0 }
 0x1da   : > { %v3900_v4 = vpack.c.bf16 %v1732_v60, %v1731_v2  ;;  %v1380_v5 = vadd.f32 %v3049_v3, %v3868_v61 }
 0x1db   : > { %v1374_v6 = vpop.f32.mrf.mxu0 }
 0x1dc   : > { %v1811_v7 = vunpack.c.l.bf16 %v3900_v4  ;;  %v1812_v8 = vunpack.c.h.bf16 %v3900_v4  ;;  %v1510_v9 = vmax.f32 %v1380_v5, 0.0  ;;  %v1375_v10 = vadd.f32 %v3868_v61, %v1374_v6 }
 0x1de   : > { %v3906_v12 = vsub.f32 %v1731_v2, %v1811_v7  ;;  %v3908_v13 = vsub.f32 %v1732_v60, %v1812_v8  ;;  %v1509_v56 = vmax.f32 %v1375_v10, 0.0  ;;  %v1734_v15 = vmul.f32 %v1605_v52, %v1510_v9 }
 0x1e0   : > { %4162 = vst [vmem:[#allocation8_spill] sm:$0xff] %v3906_v12  ;;  %4163 = vst [vmem:[#allocation9_spill] sm:$0xff] %v3908_v13  ;;  %v1733_v16 = vmul.f32 %v3855_v51, %v1509_v56 }
 0x1e1   : > { %v3052_v24 = vpop.f32.mrf.mxu0 }
 0x1e2   : > { %v3920_v18 = vpack.c.bf16 %v1734_v15, %v1733_v16  ;;  %v1390_v51 = vadd.f32 %v3052_v24, %v3868_v61 }
 0x1e3   : > { %v1384_v28 = vpop.f32.mrf.mxu0 }
 0x1e4   : > { %v1813_v22 = vunpack.c.l.bf16 %v3920_v18  ;;  %v1814_v25 = vunpack.c.h.bf16 %v3920_v18  ;;  %v1512_v27 = vmax.f32 %v1390_v51, 0.0 }
 0x1e6   : > { %v3924_v26 = vsub.f32 %v1733_v16, %v1813_v22  ;;  %v3926_v52 = vsub.f32 %v1734_v15, %v1814_v25  ;;  %v1385_v22 = vadd.f32 %v3868_v61, %v1384_v28 }
 0x1e8   : > { %v1511_v11 = vmax.f32 %v1385_v22, 0.0 }
 0x1e9   : > { %v3055_v30 = vpop.f32.mrf.mxu0 }
 0x1ea   : > { %v1400_v25 = vadd.f32 %v3055_v30, %v3868_v61 }
 0x1eb   : > { %v1394_v32 = vpop.f32.mrf.mxu0 }
 0x1ec   : > { %v1395_v16 = vadd.f32 %v3868_v61, %v1394_v32  ;;  %v1514_v32 = vmax.f32 %v1400_v25, 0.0 }
 0x1ee   : > { %v1513_v19 = vmax.f32 %v1395_v16, 0.0 }
 0x1f1   : > { %v3058_v33 = vpop.f32.mrf.mxu0 }
 0x1f2   : > { %v1410_v37 = vadd.f32 %v3058_v33, %v3868_v61 }
 0x1f3   : > { %v1404_v34 = vpop.f32.mrf.mxu0 }
 0x1f4   : > { %v1405_v59 = vadd.f32 %v3868_v61, %v1404_v34  ;;  %v3953_v34 = vmul.f32 %v3839_v42, %v1513_v19 }
 0x1f9   : > { %v3061_v36 = vpop.f32.mrf.mxu0 }
 0x1fa   : > { %v1420_v54 = vadd.f32 %v3061_v36, %v3868_v61  ;;  %v1516_v36 = vmax.f32 %v1410_v37, 0.0 }
 0x1fb   : > { %v1414_v1 = vpop.f32.mrf.mxu0 }
 0x1fc   : > { %v1415_v17 = vadd.f32 %v3868_v61, %v1414_v1  ;;  %v1515_v1 = vmax.f32 %v1405_v59, 0.0  ;;  %v1518_v13 = vmax.f32 %v1420_v54, 0.0  ;;  %v3961_v59 = vmul.f32 %v3841_v43, %v1514_v32 }
 0x1fd   : > { %v1740_v37 = vmul.f32 %v3833_v44, %v1516_v36 }
 0x1fe   : > { %v1517_v0 = vmax.f32 %v1415_v17, 0.0  ;;  %v3958_v17 = vmul.f32 %v3847_v47, %v1511_v11  ;;  %v1742_v42 = vmul.f32 %v3825_v31, %v1518_v13 }
 0x200   : > { %v1741_v16 = vmul.f32 %v3823_v29, %v1517_v0  ;;  %v3973_v29 = vpack.c.bf16 %v3961_v59, %v3953_v34 }
 0x201   : > { %v3930_v60 = vpop.f32.mrf.mxu0 }
 0x202   : > { %v1798_v0 = vpack.c.bf16 %v1742_v42, %v1741_v16  ;;  %v1817_v22 = vunpack.c.l.bf16 %v3973_v29 }
 0x203   : > { %v3932_v2 = vpop.f32.mrf.mxu0 }
 0x209   : > { %v3934_v3 = vpop.f32.mrf.mxu0 }
 0x20b   : > { %v3936_v5 = vpop.f32.mrf.mxu0 }
 0x211   : > { %v3938_v6 = vpop.f32.mrf.mxu0 }
 0x213   : > { %v3940_v7 = vpop.f32.mrf.mxu0 }
 0x219   : > { %v3073_v8 = vpop.f32.mrf.mxu0 }
 0x21a   : > { %v1460_v36 = vadd.f32 %v3073_v8, %v3868_v61 }
 0x21b   : > { %v1454_v9 = vpop.f32.mrf.mxu0 }
 0x221   : > { %v3076_v10 = vpop.f32.mrf.mxu0 }
 0x223   : > { %v1464_v56 = vpop.f32.mrf.mxu0 }
 0x224   : > { %v1465_v47 = vadd.f32 %v3868_v61, %v1464_v56 }
 0x226   : > { %v1527_v25 = vmax.f32 %v1465_v47, 0.0 }
 0x229   : > { %v3079_v15 = vpop.f32.mrf.mxu0 }
 0x22b   : > { %v1474_v23 = vpop.f32.mrf.mxu0 }
 0x22c   : > { %v1475_v24 = vadd.f32 %v3868_v61, %v1474_v23  ;;  %v3969_v23 = vmul.f32 %v3849_v48, %v1512_v27  ;;  %v1470_v48 = vadd.f32 %v3076_v10, %v3868_v61 }
 0x22e   : > { %v1529_v11 = vmax.f32 %v1475_v24, 0.0  ;;  %v3981_v31 = vpack.c.bf16 %v3969_v23, %v3958_v17  ;;  %v1822_v24 = vunpack.c.h.bf16 %v1798_v0 }
 0x230   : > { %v1753_v32 = vmul.f32 %v3835_v35, %v1529_v11 }
 0x231   : > { %v3082_v21 = vpop.f32.mrf.mxu0 }
 0x232   : > { %v1490_v28 = vadd.f32 %v3082_v21, %v3868_v61  ;;  %v1480_v21 = vadd.f32 %v3079_v15, %v3868_v61 }
 0x233   : > { %v1484_v12 = vpop.f32.mrf.mxu0 }
 0x234   : > { %v1485_v30 = vadd.f32 %v3868_v61, %v1484_v12  ;;  %v3965_v12 = vmul.f32 %v3831_v40, %v1515_v1  ;;  %v1532_v19 = vmax.f32 %v1490_v28, 0.0  ;;  %v1530_v27 = vmax.f32 %v1480_v21, 0.0 }
 0x235   : > { %v1821_v28 = vunpack.c.l.bf16 %v1798_v0 }
 0x236   : > { %v1531_v33 = vmax.f32 %v1485_v30, 0.0  ;;  %v1797_v51 = vpack.c.bf16 %v1740_v37, %v3965_v12  ;;  %v1756_v56 = vmul.f32 %v3829_v39, %v1532_v19  ;;  %v1754_v39 = vmul.f32 %v3837_v41, %v1530_v27 }
 0x237   : > { %v1445_v19 = vadd.f32 %v3868_v61, %v3940_v7  ;;  %v1450_v41 = vadd.f32 %v3938_v6, %v3868_v61  ;;  %v1526_v27 = vmax.f32 %v1460_v36, 0.0 }
 0x238   : > { %v1755_v40 = vmul.f32 %v3827_v38, %v1531_v33  ;;  %v1455_v38 = vadd.f32 %v3868_v61, %v1454_v9  ;;  %v1528_v33 = vmax.f32 %v1470_v48, 0.0  ;;  %v1819_v21 = vunpack.c.l.bf16 %v1797_v51 }
 0x239   : > { %v3085_v43 = vpop.f32.mrf.mxu0  ;;  %v1820_v35 = vunpack.c.h.bf16 %v1797_v51  ;;  %v1854_v48 = vsub.f32 %v1742_v42, %v1822_v24  ;;  %v1524_v36 = vmax.f32 %v1450_v41, 0.0 }
 0x23a   : > { %v1500_v54 = vadd.f32 %v3085_v43, %v3868_v61  ;;  %v1805_v30 = vpack.c.bf16 %v1756_v56, %v1755_v40  ;;  %v1525_v11 = vmax.f32 %v1455_v38, 0.0  ;;  %v1751_v43 = vmul.f32 %v3843_v45, %v1527_v25 }
 0x23b   : > { %v1494_v13 = vpop.f32.mrf.mxu0  ;;  %v1752_v7 = vmul.f32 %v3845_v46, %v1528_v33  ;;  %v1851_v46 = vsub.f32 %v3965_v12, %v1819_v21  ;;  %v1750_v33 = vmul.f32 %v3853_v50, %v1526_v27  ;;  %v1815_v50 = vunpack.c.l.bf16 %v3981_v31 }
 0x23c   : > { %v1534_v15 = vmax.f32 %v1500_v54, 0.0  ;;  %v1495_v44 = vadd.f32 %v3868_v61, %v1494_v13  ;;  %v1804_v54 = vpack.c.bf16 %v1754_v39, %v1753_v32  ;;  %v1853_v13 = vsub.f32 %v1741_v16, %v1821_v28 }
 0x23d   : > { %v1835_v1 = vunpack.c.l.bf16 %v1805_v30  ;;  %v1836_v8 = vunpack.c.h.bf16 %v1805_v30  ;;  %v1749_v45 = vmul.f32 %v3851_v49, %v1525_v11  ;;  %v1803_v16 = vpack.c.bf16 %v1752_v7, %v1751_v43 }
 0x23e   : > { %v1533_v10 = vmax.f32 %v1495_v44, 0.0  ;;  %v1758_v9 = vmul.f32 %v3821_v20, %v1534_v15  ;;  %v1435_v20 = vadd.f32 %v3868_v61, %v3936_v5  ;;  %v1833_v25 = vunpack.c.l.bf16 %v1804_v54 }
 0x23f   : > { %v1834_v28 = vunpack.c.h.bf16 %v1804_v54  ;;  %v1867_v6 = vsub.f32 %v1755_v40, %v1835_v1  ;;  %v1868_v24 = vsub.f32 %v1756_v56, %v1836_v8  ;;  %v1440_v5 = vadd.f32 %v3934_v3, %v3868_v61 }
 0x240   : > { %v1757_v47 = vmul.f32 %v3819_v14, %v1533_v10  ;;  %v1523_v14 = vmax.f32 %v1445_v19, 0.0  ;;  %v1852_v19 = vsub.f32 %v1740_v37, %v1820_v35  ;;  %v1425_v49 = vadd.f32 %v3868_v61, %v3932_v2 }
 0x241   : > { %v1521_v11 = vmax.f32 %v1435_v20, 0.0  ;;  %v1802_v40 = vpack.c.bf16 %v1750_v33, %v1749_v45  ;;  %v1831_v56 = vunpack.c.l.bf16 %v1803_v16  ;;  %v1885_v12 = vpack.c.bf16 %v1868_v24, %v1867_v6  ;;  %v4166_v6 = vld [vmem:[#allocation5_spill] sm:$0xff] }
 0x242   : > { %v1806_v44 = vpack.c.bf16 %v1758_v9, %v1757_v47  ;;  %v1865_v1 = vsub.f32 %v1753_v32, %v1833_v25  ;;  %v1866_v3 = vsub.f32 %v1754_v39, %v1834_v28  ;;  %v1832_v21 = vunpack.c.h.bf16 %v1803_v16 }
 0x243   : > { %v1430_v37 = vadd.f32 %v3930_v60, %v3868_v61  ;;  %v1748_v2 = vmul.f32 %v3859_v55, %v1524_v36  ;;  %v1877_v39 = vpack.c.bf16 %v1852_v19, %v1851_v46  ;;  %v1519_v35 = vmax.f32 %v1425_v49, 0.0  ;;  %v4168_v36 = vld [vmem:[#allocation8_spill] sm:$0xff]  ;;  %v3201_v19 = vld [vmem:[%s3917_s14] ss:$8 sps:$4 sm:$0xff]  }
 0x244   : > { %2910 = vmatprep.subr.bf16.mxu0 %v1806_v44  ;;  %v1837_v15 = vunpack.c.l.bf16 %v1806_v44  ;;  %v1838_v38 = vunpack.c.h.bf16 %v1806_v44  ;;  %v1878_v44 = vpack.c.bf16 %v1854_v48, %v1853_v13  ;;  %v1829_v55 = vunpack.c.l.bf16 %v1802_v40  ;;  %v3204_v49 = vld [vmem:[%s3917_s14 + $0x14] ss:$8 sps:$4 sm:$0xff]  }
 0x245   : > { %2911 = vmatpush3.bf16.msra.mxu0 %v1798_v0  ;;  %v1884_v60 = vpack.c.bf16 %v1866_v3, %v1865_v1  ;;  %v1863_v13 = vsub.f32 %v1751_v43, %v1831_v56  ;;  %v1864_v8 = vsub.f32 %v1752_v7, %v1832_v21  ;;  %v1830_v48 = vunpack.c.h.bf16 %v1802_v40  ;;  %v4175_v56 = vld [vmem:[#allocation3_spill] sm:$0xff]  ;;  %v3206_v1 = vld [vmem:[%s3917_s14 + $0x10] ss:$8 sps:$4 sm:$0xff]  }
 0x246   : > { %2912 = vmatprep.subr.bf16.mxu0 %v1805_v30  ;;  %v1869_v42 = vsub.f32 %v1757_v47, %v1837_v15  ;;  %v1870_v10 = vsub.f32 %v1758_v9, %v1838_v38  ;;  %v1747_v30 = vmul.f32 %v3857_v53, %v1523_v14  ;;  %v1522_v9 = vmax.f32 %v1440_v5, 0.0  ;;  %v4167_v5 = vld [vmem:[#allocation9_spill] sm:$0xff]  ;;  %v3207_v3 = vld [vmem:[%s3917_s14 + $0x24] ss:$8 sps:$4 sm:$0xff]   ;;  %v2271_v21 = vld [vmem:[%s4145_s8 + $0x70] sm:$0xff] }
 0x247   : > { %v1816_v53 = vunpack.c.h.bf16 %v3981_v31  ;;  %v4164_v47 = vunpack.c.h.bf16 %v3973_v29  ;;  %v1520_v41 = vmax.f32 %v1430_v37, 0.0  ;;  %v1883_v43 = vpack.c.bf16 %v1864_v8, %v1863_v13  ;;  %v2269_v37 = vld [vmem:[%s4145_s8 + $0x60] sm:$0xff]  ;;  %v3218_v13 = vld [vmem:[%s3917_s14 + $0x50] ss:$8 sps:$4 sm:$0xff]  }
 0x248   : > { %v1886_v0 = vpack.c.bf16 %v1870_v10, %v1869_v42  ;;  %v1801_v61 = vpack.c.bf16 %v1748_v2, %v1747_v30  ;;  %v1861_v7 = vsub.f32 %v1749_v45, %v1829_v55  ;;  %v1862_v14 = vsub.f32 %v1750_v33, %v1830_v48  ;;  %v3215_v55 = vld [vmem:[%s3917_s14 + $0x40] ss:$8 sps:$4 sm:$0xff]   ;;  %v3219_v8 = vld [vmem:[%s3917_s14 + $0x64] ss:$8 sps:$4 sm:$0xff]  }
 0x249   : > { %2913 = vmatpush3.bf16.msra.mxu0 %v1797_v51  ;;  %v1849_v51 = vsub.f32 %v3953_v34, %v1817_v22  ;;  %v1850_v32 = vsub.f32 %v3961_v59, %v4164_v47  ;;  %v1746_v34 = vmul.f32 %v3863_v58, %v1522_v9  ;;  %v1847_v59 = vsub.f32 %v3958_v17, %v1815_v50  ;;  %v2270_v50 = vld [vmem:[%s4145_s8 + $0x68] sm:$0xff]  ;;  %v2268_v9 = vld [vmem:[%s4145_s8 + $0x58] sm:$0xff] }
 0x24a   : > { %2846 = vmatprep.subr.bf16.mxu1 %v1886_v0  ;;  %2914 = vmatprep.subr.bf16.mxu0 %v1804_v54  ;;  %v1745_v54 = vmul.f32 %v3861_v57, %v1521_v11  ;;  %v1848_v22 = vsub.f32 %v3969_v23, %v1816_v53  ;;  %v1743_v57 = vmul.f32 %v3870_v62, %v1519_v35  ;;  %v1827_v20 = vunpack.c.l.bf16 %v1801_v61  ;;  %v4172_v0 = vld [vmem:[#allocation6_spill] sm:$0xff]  ;;  %v3210_v53 = vld [vmem:[%s3917_s14 + $0x34] ss:$8 sps:$4 sm:$0xff]   ;;  %v2266_v47 = vld [vmem:[%s4145_s8 + $0x48] sm:$0xff] }
 0x24b   : > { %2847 = vmatpush3.bf16.msra.mxu1 %v1878_v44  ;;  %v1876_v27 = vpack.c.bf16 %v1850_v32, %v1849_v51  ;;  %v1828_v15 = vunpack.c.h.bf16 %v1801_v61  ;;  %v1744_v58 = vmul.f32 %v3872_v63, %v1520_v41  ;;  %v1882_v62 = vpack.c.bf16 %v1862_v14, %v1861_v7  ;;  %v4170_v44 = vld [vmem:[#allocation2_spill] sm:$0xff]  ;;  %v2267_v51 = vld [vmem:[%s4145_s8 + $0x50] sm:$0xff] }
 0x24c   : > { %2848 = vmatprep.subr.bf16.mxu1 %v1885_v12  ;;  %v1875_v17 = vpack.c.bf16 %v1848_v22, %v1847_v59  ;;  %v4169_v33 = vpack.c.bf16 %v4167_v5, %v4168_v36  ;;  %v2265_v32 = vld [vmem:[%s4145_s8 + $0x40] sm:$0xff]  ;;  %v3212_v35 = vld [vmem:[%s3917_s14 + $0x30] ss:$8 sps:$4 sm:$0xff]   ;;  %v3222_v41 = vld [vmem:[%s3917_s14 + $0x74] ss:$8 sps:$4 sm:$0xff]  }
 0x24d   : > { %2915 = vmatpush3.bf16.msra.mxu0 %v3973_v29  ;;  %v1800_v29 = vpack.c.bf16 %v1746_v34, %v1745_v54  ;;  %v1799_v23 = vpack.c.bf16 %v1744_v58, %v1743_v57  ;;  %v3221_v48 = vld [vmem:[%s3917_s14 + $0x60] ss:$8 sps:$4 sm:$0xff]  }
 0x24e   : > { %2916 = vmatprep.subr.bf16.mxu0 %v1803_v16  ;;  %v1859_v16 = vsub.f32 %v1747_v30, %v1827_v20  ;;  %v2272_v30 = vld [vmem:[%s4145_s8 + $0x78] sm:$0xff]  ;;  %v2262_v59 = vld [vmem:[%s4145_s8 + $0x28] sm:$0xff]  ;;  %v2261_v22 = vld [vmem:[%s4145_s8 + $0x20] sm:$0xff] }
 0x24f   : > { %2849 = vmatpush3.bf16.msra.mxu1 %v1877_v39  ;;  %v1825_v38 = vunpack.c.l.bf16 %v1800_v29  ;;  %v1826_v25 = vunpack.c.h.bf16 %v1800_v29  ;;  %v1823_v45 = vunpack.c.l.bf16 %v1799_v23  ;;  %v1824_v10 = vunpack.c.h.bf16 %v1799_v23  ;;  %v2264_v39 = vld [vmem:[%s4145_s8 + $0x38] sm:$0xff]  ;;  %v2257_v20 = vld [vmem:[%s4145_s8] sm:$0xff] }
 0x250   : > { %2850 = vmatprep.subr.bf16.mxu1 %v1884_v60  ;;  %v3216_v60 = vld [vmem:[%s3917_s14 + $0x54] ss:$8 sps:$4 sm:$0xff]  }
 0x251   : > { %2917 = vmatpush3.bf16.msra.mxu0 %v3981_v31  ;;  %v1860_v31 = vsub.f32 %v1748_v2, %v1828_v15  ;;  %v1857_v28 = vsub.f32 %v1745_v54, %v1825_v38  ;;  %v1858_v42 = vsub.f32 %v1746_v34, %v1826_v25  ;;  %v1855_v46 = vsub.f32 %v1743_v57, %v1823_v45  ;;  %v3209_v2 = vld [vmem:[%s3917_s14 + $0x20] ss:$8 sps:$4 sm:$0xff]   ;;  %v3213_v54 = vld [vmem:[%s3917_s14 + $0x44] ss:$8 sps:$4 sm:$0xff]   ;;  %v3224_v34 = vld [vmem:[%s3917_s14 + $0x70] ss:$8 sps:$4 sm:$0xff]   ;;  %v2164_v25 = vpop.permute.xlu0 %2163 }
 0x252   : > { %2918 = vmatprep.subr.bf16.mxu0 %v1802_v40  ;;  %v4174_v40 = vld [vmem:[#allocation4_spill] sm:$0xff] }
 0x253   : > { %2851 = vmatpush3.bf16.msra.mxu1 %v1876_v27  ;;  %v1881_v63 = vpack.c.bf16 %v1860_v31, %v1859_v16  ;;  %v1880_v24 = vpack.c.bf16 %v1858_v42, %v1857_v28  ;;  %v4176_v12 = vpack.c.bf16 %v4174_v40, %v4175_v56  ;;  %v2260_v27 = vld [vmem:[%s4145_s8 + $0x18] sm:$0xff]  ;;  %v2259_v57 = vld [vmem:[%s4145_s8 + $0x10] sm:$0xff] }
 0x254   : > { %2852 = vmatprep.subr.bf16.mxu1 %v1883_v43 }
 0x255   : > { %2919 = vmatpush3.bf16.msra.mxu0 %v3920_v18  ;;  %v4165_v18 = vpack.c.bf16 %v3926_v52, %v3924_v26  ;;  %v4171_v52 = vld [vmem:[#allocation7_spill] sm:$0xff] }
 0x256   : > { %2920 = vmatprep.subr.bf16.mxu0 %v1801_v61  ;;  %v4173_v11 = vpack.c.bf16 %v4171_v52, %v4172_v0  ;;  %v2263_v61 = vld [vmem:[%s4145_s8 + $0x30] sm:$0xff]  ;;  %v2174_v52 = vpop.permute.xlu0 %2173 }
 0x257   : > { %2853 = vmatpush3.bf16.msra.mxu1 %v1875_v17 }
 0x258   : > { %2854 = vmatprep.subr.bf16.mxu1 %v1882_v62 }
 0x259   : > { %2921 = vmatpush3.bf16.msra.mxu0 %v3900_v4  ;;  %v1856_v4 = vsub.f32 %v1744_v58, %v1824_v10 }
 0x25a   : > { %2922 = vmatprep.subr.bf16.mxu0 %v1800_v29  ;;  %v2258_v29 = vld [vmem:[%s4145_s8 + $0x8] sm:$0xff] }
 0x25b   : > { %2855 = vmatpush3.bf16.msra.mxu1 %v4165_v18  ;;  %v1879_v26 = vpack.c.bf16 %v1856_v4, %v1855_v46  ;;  %v2169_v46 = vpop.permute.xlu1 %2168 }
 0x25c   : > { %2856 = vmatprep.subr.bf16.mxu1 %v1881_v63 }
 0x25d   : > { %2923 = vmatpush3.bf16.msra.mxu0 %v4166_v6 }
 0x25e   : > { %2924 = vmatprep.subr.bf16.mxu0 %v1799_v23 }
 0x25f   : > { %2857 = vmatpush3.bf16.msra.mxu1 %v4169_v33 }
 0x260   : > { %2858 = vmatprep.subr.bf16.mxu1 %v1880_v24 }
 0x261   : > { %2925 = vmatpush3.bf16.msra.mxu0 %v4170_v44 }
 0x263   : > { %2859 = vmatpush3.bf16.msra.mxu1 %v4173_v11 }
 0x264   : > { %2860 = vmatprep.subr.bf16.mxu1 %v1879_v26  ;;  %2097 = vmatmul.mubr.bf16.vlgmr.msra.gmra.mxu0 %v3201_v19 }
 0x265   : > { %2104 = vmatprep.mubr.bf16.mxu0 %v3204_v49 }
 0x267   : > { %2861 = vmatpush3.bf16.msra.mxu1 %v4176_v12 }
 0x268   : > { %3086 = vmatprep.subr.mxu1 %v2272_v30 }
 0x26a   : > { %2000 = vmatmul.mubr.bf16.vlgmr.msra.gmra.mxu1 %v3201_v19 }
 0x26b   : > { %2007 = vmatprep.mubr.bf16.mxu1 %v3204_v49  ;;  %3087 = vmatpush3.msra.mxu1 %v2272_v30 }
 0x26c   : > { %2105 = vmatmul.mubr.bf16.gmra.mxu0 %v3206_v1  ;;  %3088 = vmatprep.subr.mxu1 %v2271_v21 }
 0x26d   : > { %2112 = vmatprep.mubr.bf16.mxu0 %v3207_v3  ;;  %3089 = vmatpush3.msra.mxu1 %v2271_v21  ;;  %v2179_v21 = vpop.permute.xlu1 %2178 }
 0x26e   : > { %3090 = vmatprep.subr.mxu1 %v2270_v50 }
 0x26f   : > { %3091 = vmatpush3.msra.mxu1 %v2270_v50 }
 0x270   : > { %3092 = vmatprep.subr.mxu1 %v2269_v37 }
 0x271   : > { %3093 = vmatpush3.msra.mxu1 %v2269_v37 }
 0x272   : > { %2008 = vmatmul.mubr.bf16.gmra.mxu1 %v3206_v1  ;;  %3094 = vmatprep.subr.mxu1 %v2268_v9 }
 0x273   : > { %2015 = vmatprep.mubr.bf16.mxu1 %v3207_v3  ;;  %3095 = vmatpush3.msra.mxu1 %v2268_v9 }
 0x274   : > { %2113 = vmatmul.mubr.bf16.gmra.mxu0 %v3209_v2  ;;  %3096 = vmatprep.subr.mxu1 %v2267_v51 }
 0x275   : > { %2120 = vmatprep.mubr.bf16.mxu0 %v3210_v53  ;;  %3097 = vmatpush3.msra.mxu1 %v2267_v51 }
 0x276   : > { %3098 = vmatprep.subr.mxu1 %v2266_v47 }
 0x277   : > { %3099 = vmatpush3.msra.mxu1 %v2266_v47 }
 0x278   : > { %3100 = vmatprep.subr.mxu1 %v2265_v32 }
 0x279   : > { %3101 = vmatpush3.msra.mxu1 %v2265_v32 }
 0x27a   : > { %2016 = vmatmul.mubr.bf16.gmra.mxu1 %v3209_v2  ;;  %3102 = vmatprep.subr.mxu1 %v2264_v39 }
 0x27b   : > { %2023 = vmatprep.mubr.bf16.mxu1 %v3210_v53  ;;  %3103 = vmatpush3.msra.mxu1 %v2264_v39  ;;  %v2184_v39 = vpop.permute.xlu0 %2183 }
 0x27c   : > { %2121 = vmatmul.mubr.bf16.gmra.mxu0 %v3212_v35  ;;  %3104 = vmatprep.subr.mxu1 %v2263_v61 }
 0x27d   : > { %2128 = vmatprep.mubr.bf16.mxu0 %v3213_v54  ;;  %3105 = vmatpush3.msra.mxu1 %v2263_v61 }
 0x27e   : > { %3106 = vmatprep.subr.mxu1 %v2262_v59 }
 0x27f   : > { %3107 = vmatpush3.msra.mxu1 %v2262_v59 }
 0x280   : > { %3108 = vmatprep.subr.mxu1 %v2261_v22 }
 0x281   : > { %3109 = vmatpush3.msra.mxu1 %v2261_v22 }
 0x282   : > { %2024 = vmatmul.mubr.bf16.gmra.mxu1 %v3212_v35  ;;  %3110 = vmatprep.subr.mxu1 %v2260_v27 }
 0x283   : > { %2031 = vmatprep.mubr.bf16.mxu1 %v3213_v54  ;;  %3111 = vmatpush3.msra.mxu1 %v2260_v27 }
 0x284   : > { %2129 = vmatmul.mubr.bf16.gmra.mxu0 %v3215_v55  ;;  %3112 = vmatprep.subr.mxu1 %v2259_v57 }
 0x285   : > { %2136 = vmatprep.mubr.bf16.mxu0 %v3216_v60  ;;  %3113 = vmatpush3.msra.mxu1 %v2259_v57 }
 0x286   : > { %3114 = vmatprep.subr.mxu1 %v2258_v29 }
 0x287   : > { %3115 = vmatpush3.msra.mxu1 %v2258_v29 }
 0x288   : > { %3116 = vmatprep.subr.mxu1 %v2257_v20 }
 0x289   : > { %3117 = vmatpush3.msra.mxu1 %v2257_v20 }
 0x28a   : > { %2032 = vmatmul.mubr.bf16.gmra.mxu1 %v3215_v55 }
 0x28b   : > { %2039 = vmatprep.mubr.bf16.mxu1 %v3216_v60 }
 0x28c   : > { %2137 = vmatmul.mubr.bf16.gmra.mxu0 %v3218_v13 }
 0x28d   : > { %2144 = vmatprep.mubr.bf16.mxu0 %v3219_v8 }
 0x292   : > { %2040 = vmatmul.mubr.bf16.gmra.mxu1 %v3218_v13 }
 0x293   : > { %2047 = vmatprep.mubr.bf16.mxu1 %v3219_v8 }
 0x294   : > { %2145 = vmatmul.mubr.bf16.gmra.mxu0 %v3221_v48 }
 0x295   : > { %2152 = vmatprep.mubr.bf16.mxu0 %v3222_v41 }
 0x29a   : > { %2048 = vmatmul.mubr.bf16.gmra.mxu1 %v3221_v48 }
 0x29b   : > { %2055 = vmatprep.mubr.bf16.mxu1 %v3222_v41  ;;  %v2189_v41 = vpop.permute.xlu1 %2188 }
 0x29c   : > { %2153 = vmatmul.mubr.bf16.gmra.mxu0 %v3224_v34 }
 0x2a2   : > { %2056 = vmatmul.mubr.bf16.gmra.mxu1 %v3224_v34 }
 0x324   : > { %v2926_v43 = vpop.f32.mrf.mxu0 }
 0x326   : > { %v2927_v7 = vpop.f32.mrf.mxu0 }
 0x327   : > { %v2928_v62 = vadd.f32 %v2927_v7, %v2926_v43  ;;  %v2194_v7 = vpop.permute.xlu0 %2193 }
 0x328   : > { %v2929_v14 = vpop.f32.mrf.mxu0 }
 0x32a   : > { %v2862_v15 = vpop.f32.mrf.mxu1  ;;  %v2930_v58 = vpop.f32.mrf.mxu0 }
 0x32b   : > { %v2931_v10 = vadd.f32 %v2930_v58, %v2929_v14 }
 0x32c   : > { %v2863_v17 = vpop.f32.mrf.mxu1  ;;  %v2932_v23 = vpop.f32.mrf.mxu0 }
 0x32d   : > { %v2864_v38 = vadd.f32 %v2863_v17, %v2862_v15 }
 0x32e   : > { %v2865_v16 = vpop.f32.mrf.mxu1  ;;  %v2933_v31 = vpop.f32.mrf.mxu0 }
 0x32f   : > { %v2099_v45 = vadd.f32 %v2928_v62, %v2864_v38  ;;  %v2934_v44 = vadd.f32 %v2933_v31, %v2932_v23  ;;  %v2199_v31 = vpop.permute.xlu1 %2198 }
 0x330   : > { %v2866_v63 = vpop.f32.mrf.mxu1  ;;  %v2935_v28 = vpop.f32.mrf.mxu0 }
 0x331   : > { %v2867_v42 = vadd.f32 %v2866_v63, %v2865_v16  ;;  %v2241_v18 = vmul.f32 %v2164_v25, %v2099_v45 }
 0x332   : > { %v2868_v6 = vpop.f32.mrf.mxu1  ;;  %v2936_v24 = vpop.f32.mrf.mxu0 }
 0x333   : > { %v2102_v4 = vadd.f32 %v2931_v10, %v2867_v42  ;;  %3118 = vmatprep.mubr.f32.mxu1 %v2241_v18  ;;  %v2937_v56 = vadd.f32 %v2936_v24, %v2935_v28  ;;  %v2204_v24 = vpop.permute.xlu0 %2203 }
 0x334   : > { %v2869_v5 = vpop.f32.mrf.mxu1  ;;  %v2938_v36 = vpop.f32.mrf.mxu0 }
 0x335   : > { %v2242_v33 = vmul.f32 %v2169_v46, %v2102_v4  ;;  %v2870_v19 = vadd.f32 %v2869_v5, %v2868_v6 }
 0x336   : > { %v2871_v49 = vpop.f32.mrf.mxu1  ;;  %v2939_v26 = vpop.f32.mrf.mxu0 }
 0x337   : > { %v2107_v0 = vadd.f32 %v2934_v44, %v2870_v19  ;;  %3119 = vmatmul.mubr.f32.vlgmr.msra.gmra.mxu1 %v2242_v33  ;;  %v2940_v53 = vadd.f32 %v2939_v26, %v2938_v36  ;;  %v2209_v26 = vpop.permute.xlu1 %2208 }
 0x338   : > { %v2872_v11 = vpop.f32.mrf.mxu1  ;;  %v2941_v30 = vpop.f32.mrf.mxu0 }
 0x339   : > { %v2873_v40 = vadd.f32 %v2872_v11, %v2871_v49  ;;  %v2243_v12 = vmul.f32 %v2174_v52, %v2107_v0 }
 0x33a   : > { %v2874_v1 = vpop.f32.mrf.mxu1  ;;  %v2942_v3 = vpop.f32.mrf.mxu0 }
 0x33b   : > { %v2110_v50 = vadd.f32 %v2937_v56, %v2873_v40  ;;  %3121 = vmatprep.mubr.f32.mxu1 %v2243_v12  ;;  %v2943_v60 = vadd.f32 %v2942_v3, %v2941_v30  ;;  %v2214_v3 = vpop.permute.xlu0 %2213 }
 0x33c   : > { %v2875_v37 = vpop.f32.mrf.mxu1  ;;  %v2944_v9 = vpop.f32.mrf.mxu0 }
 0x33d   : > { %v2876_v2 = vadd.f32 %v2875_v37, %v2874_v1  ;;  %v2244_v51 = vmul.f32 %v2179_v21, %v2110_v50 }
 0x33e   : > { %v2877_v47 = vpop.f32.mrf.mxu1  ;;  %v2945_v32 = vpop.f32.mrf.mxu0 }
 0x33f   : > { %v2115_v35 = vadd.f32 %v2940_v53, %v2876_v2  ;;  %3122 = vmatmul.mubr.f32.gmra.mxu1 %v2244_v51  ;;  %v2946_v57 = vadd.f32 %v2945_v32, %v2944_v9  ;;  %v2219_v32 = vpop.permute.xlu1 %2218 }
 0x340   : > { %v2878_v54 = vpop.f32.mrf.mxu1  ;;  %v2947_v61 = vpop.f32.mrf.mxu0 }
 0x341   : > { %v2879_v55 = vadd.f32 %v2878_v54, %v2877_v47  ;;  %v2245_v13 = vmul.f32 %v2184_v39, %v2115_v35 }
 0x342   : > { %v2880_v8 = vpop.f32.mrf.mxu1  ;;  %v2948_v48 = vpop.f32.mrf.mxu0 }
 0x343   : > { %v2118_v34 = vadd.f32 %v2943_v60, %v2879_v55  ;;  %3124 = vmatprep.mubr.f32.mxu1 %v2245_v13  ;;  %v2949_v23 = vadd.f32 %v2948_v48, %v2947_v61 }
 0x344   : > { %v2881_v59 = vpop.f32.mrf.mxu1  ;;  %v2950_v22 = vpop.f32.mrf.mxu0 }
 0x345   : > { %v2882_v27 = vadd.f32 %v2881_v59, %v2880_v8  ;;  %v2246_v29 = vmul.f32 %v2189_v41, %v2118_v34  ;;  %v2224_v41 = vpop.permute.xlu0 %2223 }
 0x346   : > { %v2883_v20 = vpop.f32.mrf.mxu1  ;;  %v2951_v43 = vpop.f32.mrf.mxu0 }
 0x347   : > { %v2123_v14 = vadd.f32 %v2946_v57, %v2882_v27  ;;  %3125 = vmatmul.mubr.f32.gmra.mxu1 %v2246_v29  ;;  %v2952_v42 = vadd.f32 %v2951_v43, %v2950_v22  ;;  %v2229_v43 = vpop.permute.xlu1 %2228 }
 0x348   : > { %v2884_v15 = vpop.f32.mrf.mxu1  ;;  %v2953_v58 = vpop.f32.mrf.mxu0 }
 0x349   : > { %v2885_v17 = vadd.f32 %v2884_v15, %v2883_v20  ;;  %v2247_v38 = vmul.f32 %v2194_v7, %v2123_v14 }
 0x34a   : > { %v2886_v62 = vpop.f32.mrf.mxu1  ;;  %v2954_v16 = vpop.f32.mrf.mxu0 }
 0x34b   : > { %v2126_v25 = vadd.f32 %v2949_v23, %v2885_v17  ;;  %3127 = vmatprep.mubr.f32.mxu1 %v2247_v38  ;;  %v2955_v33 = vadd.f32 %v2954_v16, %v2953_v58 }
 0x34c   : > { %v2887_v45 = vpop.f32.mrf.mxu1  ;;  %v2956_v63 = vpop.f32.mrf.mxu0 }
 0x34d   : > { %v2888_v28 = vadd.f32 %v2887_v45, %v2886_v62  ;;  %v2248_v10 = vmul.f32 %v2199_v31, %v2126_v25  ;;  %v2234_v62 = vpop.permute.xlu0 %2233 }
 0x34e   : > { %v2889_v18 = vpop.f32.mrf.mxu1  ;;  %v2957_v6 = vpop.f32.mrf.mxu0 }
 0x34f   : > { %v2131_v46 = vadd.f32 %v2952_v42, %v2888_v28  ;;  %3128 = vmatmul.mubr.f32.gmra.mxu1 %v2248_v10  ;;  %v2958_v40 = vadd.f32 %v2957_v6, %v2956_v63  ;;  %v2239_v28 = vpop.permute.xlu1 %2238  ;;  %v2570_v10 = vld [vmem:[%s4146_s9] ss:$0 sm:$0xff] }
 0x350   : > { %v2890_v4 = vpop.f32.mrf.mxu1  ;;  %v2959_v5 = vpop.f32.mrf.mxu0 }
 0x351   : > { %v2891_v36 = vadd.f32 %v2890_v4, %v2889_v18  ;;  %v2249_v19 = vmul.f32 %v2204_v24, %v2131_v46 }
 0x352   : > { %v2892_v44 = vpop.f32.mrf.mxu1  ;;  %v2960_v49 = vpop.f32.mrf.mxu0 }
 0x353   : > { %v2134_v52 = vadd.f32 %v2955_v33, %v2891_v36  ;;  %3130 = vmatprep.mubr.f32.mxu1 %v2249_v19  ;;  %v2961_v2 = vadd.f32 %v2960_v49, %v2959_v5 }
 0x354   : > { %v2893_v0 = vpop.f32.mrf.mxu1  ;;  %v2962_v11 = vpop.f32.mrf.mxu0 }
 0x355   : > { %v2894_v30 = vadd.f32 %v2893_v0, %v2892_v44  ;;  %v2250_v56 = vmul.f32 %v2209_v26, %v2134_v52 }
 0x356   : > { %v2895_v12 = vpop.f32.mrf.mxu1  ;;  %v2963_v1 = vpop.f32.mrf.mxu0 }
 0x357   : > { %v2139_v21 = vadd.f32 %v2958_v40, %v2894_v30  ;;  %3131 = vmatmul.mubr.f32.gmra.mxu1 %v2250_v56  ;;  %v2964_v55 = vadd.f32 %v2963_v1, %v2962_v11 }
 0x358   : > { %v2896_v50 = vpop.f32.mrf.mxu1  ;;  %v2965_v37 = vpop.f32.mrf.mxu0 }
 0x359   : > { %v2897_v9 = vadd.f32 %v2896_v50, %v2895_v12  ;;  %v2251_v53 = vmul.f32 %v2214_v3, %v2139_v21 }
 0x35a   : > { %v2898_v51 = vpop.f32.mrf.mxu1  ;;  %v2966_v47 = vpop.f32.mrf.mxu0 }
 0x35b   : > { %v2142_v39 = vadd.f32 %v2961_v2, %v2897_v9  ;;  %3133 = vmatprep.mubr.f32.mxu1 %v2251_v53  ;;  %v2967_v22 = vadd.f32 %v2966_v47, %v2965_v37 }
 0x35c   : > { %v2899_v35 = vpop.f32.mrf.mxu1  ;;  %v2968_v54 = vpop.f32.mrf.mxu0 }
 0x35d   : > { %v2900_v61 = vadd.f32 %v2899_v35, %v2898_v51  ;;  %v2252_v60 = vmul.f32 %v2219_v32, %v2142_v39 }
 0x35e   : > { %v2901_v13 = vpop.f32.mrf.mxu1  ;;  %v2969_v8 = vpop.f32.mrf.mxu0 }
 0x35f   : > { %v2147_v48 = vadd.f32 %v2964_v55, %v2900_v61  ;;  %3134 = vmatmul.mubr.f32.gmra.mxu1 %v2252_v60  ;;  %v2970_v15 = vadd.f32 %v2969_v8, %v2968_v54 }
 0x360   : > { %v2902_v34 = vpop.f32.mrf.mxu1  ;;  %v2971_v29 = vpop.f32.mrf.mxu0 }
 0x361   : > { %v2903_v59 = vadd.f32 %v2902_v34, %v2901_v13  ;;  %v2253_v27 = vmul.f32 %v2224_v41, %v2147_v48 }
 0x362   : > { %v2904_v57 = vpop.f32.mrf.mxu1  ;;  %v2972_v23 = vpop.f32.mrf.mxu0 }
 0x363   : > { %v2150_v20 = vadd.f32 %v2967_v22, %v2903_v59  ;;  %3136 = vmatprep.mubr.f32.mxu1 %v2253_v27  ;;  %v2973_v25 = vadd.f32 %v2972_v23, %v2971_v29 }
 0x364   : > { %v2905_v7 = vpop.f32.mrf.mxu1 }
 0x365   : > { %v2906_v14 = vadd.f32 %v2905_v7, %v2904_v57  ;;  %v2254_v58 = vmul.f32 %v2229_v43, %v2150_v20 }
 0x366   : > { %v2907_v17 = vpop.f32.mrf.mxu1 }
 0x367   : > { %v2155_v38 = vadd.f32 %v2970_v15, %v2906_v14  ;;  %3137 = vmatmul.mubr.f32.gmra.mxu1 %v2254_v58 }
 0x368   : > { %v2908_v16 = vpop.f32.mrf.mxu1 }
 0x369   : > { %v2909_v31 = vadd.f32 %v2908_v16, %v2907_v17  ;;  %v2255_v45 = vmul.f32 %v2234_v62, %v2155_v38 }
 0x36b   : > { %v2158_v63 = vadd.f32 %v2973_v25, %v2909_v31  ;;  %3139 = vmatprep.mubr.f32.mxu1 %v2255_v45 }
 0x36d   : > { %v2256_v42 = vmul.f32 %v2239_v28, %v2158_v63 }
 0x36f   : > { %3140 = vmatmul.mubr.f32.gmra.mxu1 %v2256_v42 }
 0x3f7   : > { %v3120_v18 = vpop.f32.mrf.mxu1 }
 0x3f8   : > { %v2352_v6 = vadd.f32 %v3120_v18, %v2570_v10 }
 0x3f9   : > { %v2346_v24 = vpop.f32.mrf.mxu1 }
 0x3fa   : > { %2426 = vst [vmem:[%s4116_s17 + $0x8] sm:$0xff] %v2352_v6  ;;  %v2347_v46 = vadd.f32 %v2570_v10, %v2346_v24 }
 0x3fc   : > { %2425 = vst [vmem:[%s4116_s17] sm:$0xff] %v2347_v46 }
 0x3ff   : > { %v3123_v4 = vpop.f32.mrf.mxu1 }
 0x400   : > { %v2362_v5 = vadd.f32 %v3123_v4, %v2570_v10 }
 0x401   : > { %v2356_v36 = vpop.f32.mrf.mxu1 }
 0x402   : > { %2428 = vst [vmem:[%s4116_s17 + $0x18] sm:$0xff] %v2362_v5  ;;  %v2357_v33 = vadd.f32 %v2570_v10, %v2356_v36 }
 0x404   : > { %2427 = vst [vmem:[%s4116_s17 + $0x10] sm:$0xff] %v2357_v33 }
 0x407   : > { %v3126_v19 = vpop.f32.mrf.mxu1 }
 0x408   : > { %v2372_v44 = vadd.f32 %v3126_v19, %v2570_v10 }
 0x409   : > { %v2366_v49 = vpop.f32.mrf.mxu1 }
 0x40a   : > { %2430 = vst [vmem:[%s4116_s17 + $0x28] sm:$0xff] %v2372_v44  ;;  %v2367_v26 = vadd.f32 %v2570_v10, %v2366_v49 }
 0x40c   : > { %2429 = vst [vmem:[%s4116_s17 + $0x20] sm:$0xff] %v2367_v26 }
 0x40f   : > { %v3129_v52 = vpop.f32.mrf.mxu1 }
 0x410   : > { %v2382_v0 = vadd.f32 %v3129_v52, %v2570_v10 }
 0x411   : > { %v2376_v11 = vpop.f32.mrf.mxu1 }
 0x412   : > { %2432 = vst [vmem:[%s4116_s17 + $0x38] sm:$0xff] %v2382_v0  ;;  %v2377_v30 = vadd.f32 %v2570_v10, %v2376_v11 }
 0x414   : > { %2431 = vst [vmem:[%s4116_s17 + $0x30] sm:$0xff] %v2377_v30 }
 0x417   : > { %v3132_v40 = vpop.f32.mrf.mxu1 }
 0x418   : > { %v2392_v56 = vadd.f32 %v3132_v40, %v2570_v10 }
 0x419   : > { %v2386_v12 = vpop.f32.mrf.mxu1 }
 0x41a   : > { %2434 = vst [vmem:[%s4116_s17 + $0x48] sm:$0xff] %v2392_v56  ;;  %v2387_v1 = vadd.f32 %v2570_v10, %v2386_v12 }
 0x41c   : > { %2433 = vst [vmem:[%s4116_s17 + $0x40] sm:$0xff] %v2387_v1 }
 0x41f   : > { %v3135_v3 = vpop.f32.mrf.mxu1 }
 0x420   : > { %v2402_v21 = vadd.f32 %v3135_v3, %v2570_v10 }
 0x421   : > { %v2396_v50 = vpop.f32.mrf.mxu1 }
 0x422   : > { %2436 = vst [vmem:[%s4116_s17 + $0x58] sm:$0xff] %v2402_v21  ;;  %v2397_v37 = vadd.f32 %v2570_v10, %v2396_v50 }
 0x424   : > { %2435 = vst [vmem:[%s4116_s17 + $0x50] sm:$0xff] %v2397_v37 }
 0x427   : > { %v3138_v9 = vpop.f32.mrf.mxu1 }
 0x428   : > { %v2412_v2 = vadd.f32 %v3138_v9, %v2570_v10 }
 0x429   : > { %v2406_v53 = vpop.f32.mrf.mxu1 }
 0x42a   : > { %2438 = vst [vmem:[%s4116_s17 + $0x68] sm:$0xff] %v2412_v2  ;;  %v2407_v51 = vadd.f32 %v2570_v10, %v2406_v53 }
 0x42c   : > { %2437 = vst [vmem:[%s4116_s17 + $0x60] sm:$0xff] %v2407_v51 }
 0x42f   : > { %v3141_v47 = vpop.f32.mrf.mxu1 }
 0x430   : > { %v2422_v32 = vadd.f32 %v3141_v47, %v2570_v10 }
 0x431   : > { %v2416_v39 = vpop.f32.mrf.mxu1 }
 0x432   : > { %2440 = vst [vmem:[%s4116_s17 + $0x78] sm:$0xff] %v2422_v32  ;;  %v2417_v35 = vadd.f32 %v2570_v10, %v2416_v39 }
 0x434   : > { %2439 = vst [vmem:[%s4116_s17 + $0x70] sm:$0xff] %v2417_v35 }
 0x435 PF: > { %s20_s13 = sadd.s32 1, %s3231_s13  }
 0x436   : > { %p17_p4 = scmp.ge.s32.totalorder %s20_s13, 4  }
 0x438   :  { %19 = sbr.rel (!%p17_p4) target bundleno = 1 (0x1), region = 93 }

</bundles_post_ra>
